<compile_context>
chip_gen: v7x
topology: tpu7x:2x2x1
jax: 0.10.0
libtpu: 0.0.40
codegen_flags: <defaults>
</compile_context>

<pallas_src>
import functools

import jax
import jax.numpy as jnp
from jax.experimental import pallas as pl
from jax.experimental.pallas import tpu as pltpu


def _round_up(x, m):
    return ((x + m - 1) // m) * m


# ---- static tap -> matmul-group decomposition (trace-time Python, no runtime cost) --
#
# Both convs are 3x3 / stride 2 / pad 1.  The wrapper supplies X4, a 4x4
# space-to-depth of the zero-padded input:
#     X4[n, R, C, (rs*4+cs)*Cin + ic] = x_pad[n, 4R+rs, 4C+cs, ic]
# Stage-1 outputs are produced per (row, col) parity class (p, q): class element
# (a, b) is y1[2a+p, 2b+q]; its 9 taps read x_pad[4a + 2p + kh, 4b + 2q + kw], i.e. a
# unit-stride slice of X4 at block offset ((2p+kh)//4, (2q+kw)//4) and channel slot
# ((2p+kh)%4, (2q+kw)%4).  Taps sharing a block offset merge into one matmul whose
# weight matrix scatters each tap into its slot's Cin rows (K = 16*Cin).
#
# The classes are written into a VMEM scratch S2 holding the 2x2 space-to-depth of
# the zero-padded stage-1 activation:
#     S2[n, hs, ws, (ph*2+pw)*C1p + c] = y1_pad[n, 2hs+ph, 2ws+pw, c]
# so stage 2 is the same trick one level up: 4 group-merged matmuls with K = 4*C1p.

def _stage1_groups():
    out = []
    for p in (0, 1):
        for q in (0, 1):
            groups = {}
            for kh in range(3):
                for kw in range(3):
                    dh4, rs = divmod(2 * p + kh, 4)
                    dw4, cs = divmod(2 * q + kw, 4)
                    groups.setdefault((dh4, dw4), []).append((rs * 4 + cs, kh, kw))
            for (dh4, dw4), taps in sorted(groups.items()):
                out.append((p, q, dh4, dw4, tuple(taps)))
    return tuple(out)


def _stage2_groups():
    groups = {}
    for kh in range(3):
        for kw in range(3):
            dh, ph = divmod(kh, 2)
            dw, pw = divmod(kw, 2)
            groups.setdefault((dh, dw), []).append((ph * 2 + pw, kh, kw))
    return tuple((dh, dw, tuple(taps)) for (dh, dw), taps in sorted(groups.items()))


S1_GROUPS = _stage1_groups()      # 9 groups (1+2+2+4 over the 4 parity classes)
S2_GROUPS = _stage2_groups()      # 4 groups


def _pack_stage1_weights(w1_oihw, c1p):
    """(C1, Cin, 3, 3) -> (9, 16*Cin, C1p) bf16: one merged matrix per group."""
    c1, cin = w1_oihw.shape[:2]
    mats = []
    for (_, _, _, _, taps) in S1_GROUPS:
        m = jnp.zeros((16 * cin, c1p), jnp.float32)
        for slot, kh, kw in taps:
            m = m.at[slot * cin:(slot + 1) * cin, :c1].set(w1_oihw[:, :, kh, kw].T)
        mats.append(m)
    return jnp.stack(mats).astype(jnp.bfloat16)


def _pack_stage2_weights(w2_oihw, c1p, c2p):
    """(C2, C1, 3, 3) -> (4, 4*C1p, C2p) bf16: one merged matrix per group."""
    c2, c1 = w2_oihw.shape[:2]
    mats = []
    for (_, _, taps) in S2_GROUPS:
        m = jnp.zeros((4 * c1p, c2p), jnp.float32)
        for slot, kh, kw in taps:
            m = m.at[slot * c1p:slot * c1p + c1, :c2].set(w2_oihw[:, :, kh, kw].T)
        mats.append(m)
    return jnp.stack(mats).astype(jnp.bfloat16)


# ------------------------------ fused conv-body kernel ------------------------------

def _fused_body_kernel(x4_ref, w1g_ref, b1_ref, w2g_ref, b2_ref, o_ref, s2_ref,
                       *, N, Ho2, Wo2p, Cin, C1p, C2p):
    """Two fused 3x3/stride-2 conv + bias + ReLU stages in one grid step.

    x4_ref : (N, Ho2+1, Wo2p+1, 16*Cin) bf16   4x4 space-to-depth of padded input
    w1g_ref: (9, 16*Cin, C1p)           bf16   stage-1 group-merged weights
    b1_ref : (1, C1p)                   f32
    w2g_ref: (4, 4*C1p, C2p)            bf16   stage-2 group-merged weights
    b2_ref : (1, C2p)                   f32
    o_ref  : (N*Ho2*Wo2p, C2p)          f32    lane-dense output rows
    s2_ref : (N, Ho2+1, Wo2p+1, 4*C1p)  bf16   VMEM scratch: s2d of padded stage-1 act
    """
    M = N * Ho2 * Wo2p
    Cin16 = 16 * Cin
    x4 = x4_ref[...]
    b1 = b1_ref[...]

    # Unwritten cells of the intermediate are stage-2's zero conv-padding border.
    s2_ref[...] = jnp.zeros_like(s2_ref)

    # ---- stage 1: four parity classes, group-merged matmuls (K = 16*Cin) ----
    by_class = {}
    for g, (p, q, dh4, dw4, _) in enumerate(S1_GROUPS):       # static, trace-time
        by_class.setdefault((p, q), []).append((g, dh4, dw4))
    for (p, q), groups in sorted(by_class.items()):
        acc = jnp.zeros((M, C1p), jnp.float32)
        for g, dh4, dw4 in groups:
            lhs = x4[:, dh4:dh4 + Ho2, dw4:dw4 + Wo2p, :].reshape(M, Cin16)
            acc += jnp.dot(lhs, w1g_ref[g], preferred_element_type=jnp.float32)
        a = jnp.maximum(acc + b1, 0.0)                        # f32 epilogue (v5e-safe)
        a = a.astype(jnp.bfloat16).reshape(N, Ho2, Wo2p, C1p)
        slot = (1 - p) * 2 + (1 - q)                          # s2d channel slot
        s2_ref[:, p:p + Ho2, q:q + Wo2p, slot * C1p:(slot + 1) * C1p] = a

    # ---- stage 2: four group-merged matmuls on the VMEM intermediate (K = 4*C1p) ----
    acc2 = jnp.zeros((M, C2p), jnp.float32)
    for g2, (dh, dw, _) in enumerate(S2_GROUPS):
        lhs = s2_ref[:, dh:dh + Ho2, dw:dw + Wo2p, :].reshape(M, 4 * C1p)
        acc2 += jnp.dot(lhs, w2g_ref[g2], preferred_element_type=jnp.float32)
    o_ref[...] = jnp.maximum(acc2 + b2_ref[...], 0.0).astype(o_ref.dtype)


def backbone_body_fused(x_nchw, w1g, b1p, w2g, b2p, *, Cout):
    """Two chained 3x3/stride-2/pad-1 conv+ReLU stages via a single pallas_call."""
    N, Cin, H, W = x_nchw.shape
    C1p = w1g.shape[-1]
    C2p = w2g.shape[-1]
    Ho1 = (H - 1) // 2 + 1
    Wo1 = (W - 1) // 2 + 1
    # TODO(synk): generalize to odd stage-1 extents (needs an extra zero row/col class).
    assert Ho1 % 2 == 0 and Wo1 % 2 == 0, "fused kernel assumes even H/2 and W/2"
    Ho2, Wo2 = Ho1 // 2, Wo1 // 2
    Wo2p = _round_up(Wo2, 8)         # sublane-multiple W -> in-kernel reshapes are clean
    HB, WB = Ho2 + 1, Wo2p + 1

    # Wrapper glue (one fused XLA pass): NCHW->NHWC, zero-pad (conv pad offset 1) to a
    # 4x4-divisible canvas, 4x4 space-to-depth, bf16 cast for the MXU operands.
    x = jnp.transpose(x_nchw, (0, 2, 3, 1))
    Hp, Wp = 4 * HB, 4 * WB
    xp = jnp.pad(x, ((0, 0), (1, Hp - H - 1), (1, Wp - W - 1), (0, 0)))
    x4 = (xp.reshape(N, HB, 4, WB, 4, Cin)
            .transpose(0, 1, 3, 2, 4, 5)
            .reshape(N, HB, WB, 16 * Cin)
            .astype(jnp.bfloat16))

    M = N * Ho2 * Wo2p
    kernel = functools.partial(_fused_body_kernel,
                               N=N, Ho2=Ho2, Wo2p=Wo2p, Cin=Cin, C1p=C1p, C2p=C2p)
    out = pl.pallas_call(
        kernel,
        out_shape=jax.ShapeDtypeStruct((M, C2p), jnp.float32),
        grid=(1,),   # whole (toy-sized) problem in one step; batch folded into M
        in_specs=[
            pl.BlockSpec((N, HB, WB, 16 * Cin), lambda i: (0, 0, 0, 0)),
            pl.BlockSpec(w1g.shape, lambda i: (0, 0, 0)),
            pl.BlockSpec((1, C1p), lambda i: (0, 0)),
            pl.BlockSpec(w2g.shape, lambda i: (0, 0, 0)),
            pl.BlockSpec((1, C2p), lambda i: (0, 0)),
        ],
        out_specs=pl.BlockSpec((M, C2p), lambda i: (0, 0)),
        scratch_shapes=[pltpu.VMEM((N, HB, WB, 4 * C1p), jnp.bfloat16)],
        compiler_params=pltpu.CompilerParams(dimension_semantics=("arbitrary",)),
        cost_estimate=pl.CostEstimate(
            flops=2 * M * (9 * 16 * Cin * C1p + 16 * C1p * C2p),
            transcendentals=0,
            bytes_accessed=(x4.size + w1g.size + w2g.size) * 2 + M * C2p * 4),
    )(x4, w1g, b1p, w2g, b2p)

    # TODO(synk): at real ResNet-layer4 sizes, tile M (= N*Ho2 rows) with a 'parallel'
    # grid axis sized so blocks stay <= ~48 MiB VMEM on v7x (set vmem_limit_bytes),
    # enabling DMA/compute double-buffering and both v7x TensorCores.
    feat = out.reshape(N, Ho2, Wo2p, C2p)[:, :, :Wo2, :Cout]
    return jnp.transpose(feat, (0, 3, 1, 2))               # NHWC -> NCHW


# --------------------------------- BackboneBase -------------------------------------

class BackboneBasePallas:
    """Synthetic BackboneBase: body -> {'0': feature map}; mask resized per output."""

    def __init__(self, key, in_channels=4, mid_channels=16, num_channels=32):
        k1, k2, k3, k4 = jax.random.split(key, 4)
        self.w1 = 0.1 * jax.random.normal(k1, (mid_channels, in_channels, 3, 3), jnp.float32)
        self.b1 = 0.1 * jax.random.normal(k2, (mid_channels,), jnp.float32)
        self.w2 = 0.1 * jax.random.normal(k3, (num_channels, mid_channels, 3, 3), jnp.float32)
        self.b2 = 0.1 * jax.random.normal(k4, (num_channels,), jnp.float32)
        self.num_channels = num_channels

        # One-time weight packing (eager, in __init__; not redone per forward call).
        c1p = _round_up(mid_channels, 128)   # lane-dense, carried between both stages
        c2p = _round_up(num_channels, 128)
        self.w1g = _pack_stage1_weights(self.w1, c1p)
        self.w2g = _pack_stage2_weights(self.w2, c1p, c2p)
        self.b1p = jnp.pad(self.b1, (0, c1p - mid_channels)).reshape(1, c1p)
        self.b2p = jnp.pad(self.b2, (0, c2p - num_channels)).reshape(1, c2p)

    def forward(self, tensors_nchw, mask):
        # self.body(tensor_list.tensors): synthetic 'layer4' = two stride-2 conv+ReLU
        # stages fused into one Pallas kernel (intermediate never leaves VMEM).
        feat = backbone_body_fused(tensors_nchw, self.w1g, self.b1p, self.w2g, self.b2p,
                                   Cout=self.num_channels)
        xs = {'0': feat}

        out = {}
        for name, xf in xs.items():
            # F.interpolate(m[None].float(), size, mode='nearest').to(bool)[0]
            # == static nearest-index gather (cheaper than any kernel at this size).
            Ho, Wo = xf.shape[-2:]
            rows = (jnp.arange(Ho) * mask.shape[-2]) // Ho
            cols = (jnp.arange(Wo) * mask.shape[-1]) // Wo
            m = mask[:, rows][:, :, cols]
            out[name] = (xf, m)                            # NestedTensor(x, mask)
        return out


# ---------------------------------- reference ---------------------------------------

def _reference_body(x_nchw, w1, b1, w2, b2):
    def conv(x, w, b):
        y = jax.lax.conv_general_dilated(
            x, w, window_strides=(2, 2), padding=((1, 1), (1, 1)),
            dimension_numbers=('NCHW', 'OIHW', 'NCHW'))
        return jax.nn.relu(y + b[None, :, None, None])
    return conv(conv(x_nchw, w1, b1), w2, b2)


if __name__ == "__main__":
    key = jax.random.PRNGKey(0)
    kx, kmod = jax.random.split(key)

    # PyTorch-style NCHW image batch and NestedTensor padding mask
    x = jax.random.normal(kx, (2, 4, 16, 16), jnp.float32)
    col = jnp.arange(16)
    row = jnp.arange(16)
    valid = jnp.array([16, 12])                             # per-image valid extent
    mask = ((col[None, None, :] >= valid[:, None, None]) |
            (row[None, :, None] >= valid[:, None, None]))   # [2,16,16] bool

    model = BackboneBasePallas(kmod, in_channels=4, mid_channels=16, num_channels=32)
    fwd = jax.jit(model.forward)
    out = fwd(x, mask)
    feat, m = out['0']
    jax.block_until_ready(feat)
    jax.block_until_ready(m)

    assert feat.shape == (2, 32, 4, 4) and feat.dtype == jnp.float32
    assert m.shape == (2, 4, 4) and m.dtype == jnp.bool_

    # Correctness vs. a pure-JAX conv reference (bf16 MXU operands -> loose tolerance).
    feat_ref = _reference_body(x, model.w1, model.b1, model.w2, model.b2)
    err = float(jnp.max(jnp.abs(feat - feat_ref)))
    assert err < 5e-2, f"conv body max abs err {err}"

    rows = (jnp.arange(4) * 16) // 4
    cols = (jnp.arange(4) * 16) // 4
    assert bool(jnp.all(m == mask[:, rows][:, :, cols]))

    print("KERNEL_OK")
</pallas_src>

<mosaic_0001>
module attributes {stable_mosaic.version = 11 : i64} {
  func.func @_fused_body_kernel(%arg0: i32, %arg1: memref<2x5x9x64xbf16, #tpu.memory_space<vmem>>, %arg2: memref<9x64x128xbf16, #tpu.memory_space<vmem>>, %arg3: memref<1x128xf32, #tpu.memory_space<vmem>>, %arg4: memref<4x512x128xbf16, #tpu.memory_space<vmem>>, %arg5: memref<1x128xf32, #tpu.memory_space<vmem>>, %arg6: memref<64x128xf32, #tpu.memory_space<vmem>>, %arg7: memref<2x5x9x512xbf16, #tpu.memory_space<vmem>>) attributes {dimension_semantics = [#tpu.dimension_semantics<arbitrary>], iteration_bounds = array<i64: 1>, scalar_prefetch = 0 : i64, scratch_operands = 1 : i64, tpu.core_type = #tpu.core_type<tc>, window_params = [{pipeline_mode = #tpu.pipeline_mode<synchronous>, transform_indices = @transform_0, window_bounds = array<i64: 2, 5, 9, 64>}, {pipeline_mode = #tpu.pipeline_mode<synchronous>, transform_indices = @transform_1, window_bounds = array<i64: 9, 64, 128>}, {pipeline_mode = #tpu.pipeline_mode<synchronous>, transform_indices = @transform_2, window_bounds = array<i64: 1, 128>}, {pipeline_mode = #tpu.pipeline_mode<synchronous>, transform_indices = @transform_3, window_bounds = array<i64: 4, 512, 128>}, {pipeline_mode = #tpu.pipeline_mode<synchronous>, transform_indices = @transform_4, window_bounds = array<i64: 1, 128>}, {pipeline_mode = #tpu.pipeline_mode<synchronous>, transform_indices = @transform_5, window_bounds = array<i64: 64, 128>}]} {
    %c0 = arith.constant 0 : index
    %c0_0 = arith.constant 0 : index
    %c0_1 = arith.constant 0 : index
    %c0_2 = arith.constant 0 : index
    %0 = vector.load %arg1[%c0, %c0_0, %c0_1, %c0_2] : memref<2x5x9x64xbf16, #tpu.memory_space<vmem>>, vector<2x5x9x64xbf16>
    %c0_3 = arith.constant 0 : index
    %c0_4 = arith.constant 0 : index
    %1 = vector.load %arg3[%c0_3, %c0_4] : memref<1x128xf32, #tpu.memory_space<vmem>>, vector<1x128xf32>
    %cst = arith.constant 0.000000e+00 : bf16
    %2 = vector.broadcast %cst : bf16 to vector<2x5x9x512xbf16>
    %c0_5 = arith.constant 0 : index
    %c0_6 = arith.constant 0 : index
    %c0_7 = arith.constant 0 : index
    %c0_8 = arith.constant 0 : index
    %3 = vector.load %arg7[%c0_5, %c0_6, %c0_7, %c0_8] : memref<2x5x9x512xbf16, #tpu.memory_space<vmem>>, vector<2x5x9x512xbf16>
    tpu.vector_store %arg7[%c0_5, %c0_6, %c0_7, %c0_8], %2 {strides = array<i32>} : memref<2x5x9x512xbf16, #tpu.memory_space<vmem>>, vector<2x5x9x512xbf16>,
    %cst_9 = arith.constant 0.000000e+00 : f32
    %4 = vector.broadcast %cst_9 : f32 to vector<64x128xf32>
    %5 = vector.extract_strided_slice %0 {offsets = [0, 0, 0, 0], sizes = [2, 4, 8, 64], strides = [1, 1, 1, 1]} : vector<2x5x9x64xbf16> to vector<2x4x8x64xbf16>
    %6 = vector.shape_cast %5 : vector<2x4x8x64xbf16> to vector<64x64xbf16>
    %c0_10 = arith.constant 0 : index
    %c0_11 = arith.constant 0 : index
    %c0_12 = arith.constant 0 : index
    %7 = vector.load %arg2[%c0_10, %c0_11, %c0_12] : memref<9x64x128xbf16, #tpu.memory_space<vmem>>, vector<1x64x128xbf16>
    %8 = vector.shape_cast %7 : vector<1x64x128xbf16> to vector<64x128xbf16>
    %cst_13 = arith.constant dense<0.000000e+00> : vector<64x128xf32>
    %9 = tpu.matmul %6, %8, %cst_13 {dimension_numbers = #tpu.dot_dimension_numbers<[1], [0], [0], [1], [0, 0, 1, 1], [], []>} : vector<64x64xbf16>, vector<64x128xbf16>, vector<64x128xf32> -> vector<64x128xf32>
    %10 = arith.addf %4, %9 : vector<64x128xf32>
    %11 = vector.broadcast %1 : vector<1x128xf32> to vector<64x128xf32>
    %12 = arith.addf %10, %11 : vector<64x128xf32>
    %cst_14 = arith.constant 0.000000e+00 : f32
    %13 = vector.broadcast %cst_14 : f32 to vector<64x128xf32>
    %14 = arith.maximumf %12, %13 : vector<64x128xf32>
    %15 = arith.truncf %14 : vector<64x128xf32> to vector<64x128xbf16>
    %16 = vector.shape_cast %15 : vector<64x128xbf16> to vector<2x4x8x128xbf16>
    %c0_15 = arith.constant 0 : index
    %c0_16 = arith.constant 0 : index
    %c0_17 = arith.constant 0 : index
    %c384 = arith.constant 384 : index
    %17 = vector.load %arg7[%c0_15, %c0_16, %c0_17, %c384] : memref<2x5x9x512xbf16, #tpu.memory_space<vmem>>, vector<2x4x8x128xbf16>
    tpu.vector_store %arg7[%c0_15, %c0_16, %c0_17, %c384], %16 {strides = array<i32>} : memref<2x5x9x512xbf16, #tpu.memory_space<vmem>>, vector<2x4x8x128xbf16>,
    %cst_18 = arith.constant 0.000000e+00 : f32
    %18 = vector.broadcast %cst_18 : f32 to vector<64x128xf32>
    %19 = vector.extract_strided_slice %0 {offsets = [0, 0, 0, 0], sizes = [2, 4, 8, 64], strides = [1, 1, 1, 1]} : vector<2x5x9x64xbf16> to vector<2x4x8x64xbf16>
    %20 = vector.shape_cast %19 : vector<2x4x8x64xbf16> to vector<64x64xbf16>
    %c1 = arith.constant 1 : index
    %c0_19 = arith.constant 0 : index
    %c0_20 = arith.constant 0 : index
    %21 = vector.load %arg2[%c1, %c0_19, %c0_20] : memref<9x64x128xbf16, #tpu.memory_space<vmem>>, vector<1x64x128xbf16>
    %22 = vector.shape_cast %21 : vector<1x64x128xbf16> to vector<64x128xbf16>
    %cst_21 = arith.constant dense<0.000000e+00> : vector<64x128xf32>
    %23 = tpu.matmul %20, %22, %cst_21 {dimension_numbers = #tpu.dot_dimension_numbers<[1], [0], [0], [1], [0, 0, 1, 1], [], []>} : vector<64x64xbf16>, vector<64x128xbf16>, vector<64x128xf32> -> vector<64x128xf32>
    %24 = arith.addf %18, %23 : vector<64x128xf32>
    %25 = vector.extract_strided_slice %0 {offsets = [0, 0, 1, 0], sizes = [2, 4, 8, 64], strides = [1, 1, 1, 1]} : vector<2x5x9x64xbf16> to vector<2x4x8x64xbf16>
    %26 = vector.shape_cast %25 : vector<2x4x8x64xbf16> to vector<64x64xbf16>
    %c2 = arith.constant 2 : index
    %c0_22 = arith.constant 0 : index
    %c0_23 = arith.constant 0 : index
    %27 = vector.load %arg2[%c2, %c0_22, %c0_23] : memref<9x64x128xbf16, #tpu.memory_space<vmem>>, vector<1x64x128xbf16>
    %28 = vector.shape_cast %27 : vector<1x64x128xbf16> to vector<64x128xbf16>
    %cst_24 = arith.constant dense<0.000000e+00> : vector<64x128xf32>
    %29 = tpu.matmul %26, %28, %cst_24 {dimension_numbers = #tpu.dot_dimension_numbers<[1], [0], [0], [1], [0, 0, 1, 1], [], []>} : vector<64x64xbf16>, vector<64x128xbf16>, vector<64x128xf32> -> vector<64x128xf32>
    %30 = arith.addf %24, %29 : vector<64x128xf32>
    %31 = vector.broadcast %1 : vector<1x128xf32> to vector<64x128xf32>
    %32 = arith.addf %30, %31 : vector<64x128xf32>
    %cst_25 = arith.constant 0.000000e+00 : f32
    %33 = vector.broadcast %cst_25 : f32 to vector<64x128xf32>
    %34 = arith.maximumf %32, %33 : vector<64x128xf32>
    %35 = arith.truncf %34 : vector<64x128xf32> to vector<64x128xbf16>
    %36 = vector.shape_cast %35 : vector<64x128xbf16> to vector<2x4x8x128xbf16>
    %c0_26 = arith.constant 0 : index
    %c0_27 = arith.constant 0 : index
    %c1_28 = arith.constant 1 : index
    %c256 = arith.constant 256 : index
    %37 = vector.load %arg7[%c0_26, %c0_27, %c1_28, %c256] : memref<2x5x9x512xbf16, #tpu.memory_space<vmem>>, vector<2x4x8x128xbf16>
    tpu.vector_store %arg7[%c0_26, %c0_27, %c1_28, %c256], %36 {strides = array<i32>} : memref<2x5x9x512xbf16, #tpu.memory_space<vmem>>, vector<2x4x8x128xbf16>,
    %cst_29 = arith.constant 0.000000e+00 : f32
    %38 = vector.broadcast %cst_29 : f32 to vector<64x128xf32>
    %39 = vector.extract_strided_slice %0 {offsets = [0, 0, 0, 0], sizes = [2, 4, 8, 64], strides = [1, 1, 1, 1]} : vector<2x5x9x64xbf16> to vector<2x4x8x64xbf16>
    %40 = vector.shape_cast %39 : vector<2x4x8x64xbf16> to vector<64x64xbf16>
    %c3 = arith.constant 3 : index
    %c0_30 = arith.constant 0 : index
    %c0_31 = arith.constant 0 : index
    %41 = vector.load %arg2[%c3, %c0_30, %c0_31] : memref<9x64x128xbf16, #tpu.memory_space<vmem>>, vector<1x64x128xbf16>
    %42 = vector.shape_cast %41 : vector<1x64x128xbf16> to vector<64x128xbf16>
    %cst_32 = arith.constant dense<0.000000e+00> : vector<64x128xf32>
    %43 = tpu.matmul %40, %42, %cst_32 {dimension_numbers = #tpu.dot_dimension_numbers<[1], [0], [0], [1], [0, 0, 1, 1], [], []>} : vector<64x64xbf16>, vector<64x128xbf16>, vector<64x128xf32> -> vector<64x128xf32>
    %44 = arith.addf %38, %43 : vector<64x128xf32>
    %45 = vector.extract_strided_slice %0 {offsets = [0, 1, 0, 0], sizes = [2, 4, 8, 64], strides = [1, 1, 1, 1]} : vector<2x5x9x64xbf16> to vector<2x4x8x64xbf16>
    %46 = vector.shape_cast %45 : vector<2x4x8x64xbf16> to vector<64x64xbf16>
    %c4 = arith.constant 4 : index
    %c0_33 = arith.constant 0 : index
    %c0_34 = arith.constant 0 : index
    %47 = vector.load %arg2[%c4, %c0_33, %c0_34] : memref<9x64x128xbf16, #tpu.memory_space<vmem>>, vector<1x64x128xbf16>
    %48 = vector.shape_cast %47 : vector<1x64x128xbf16> to vector<64x128xbf16>
    %cst_35 = arith.constant dense<0.000000e+00> : vector<64x128xf32>
    %49 = tpu.matmul %46, %48, %cst_35 {dimension_numbers = #tpu.dot_dimension_numbers<[1], [0], [0], [1], [0, 0, 1, 1], [], []>} : vector<64x64xbf16>, vector<64x128xbf16>, vector<64x128xf32> -> vector<64x128xf32>
    %50 = arith.addf %44, %49 : vector<64x128xf32>
    %51 = vector.broadcast %1 : vector<1x128xf32> to vector<64x128xf32>
    %52 = arith.addf %50, %51 : vector<64x128xf32>
    %cst_36 = arith.constant 0.000000e+00 : f32
    %53 = vector.broadcast %cst_36 : f32 to vector<64x128xf32>
    %54 = arith.maximumf %52, %53 : vector<64x128xf32>
    %55 = arith.truncf %54 : vector<64x128xf32> to vector<64x128xbf16>
    %56 = vector.shape_cast %55 : vector<64x128xbf16> to vector<2x4x8x128xbf16>
    %c0_37 = arith.constant 0 : index
    %c1_38 = arith.constant 1 : index
    %c0_39 = arith.constant 0 : index
    %c128 = arith.constant 128 : index
    %57 = vector.load %arg7[%c0_37, %c1_38, %c0_39, %c128] : memref<2x5x9x512xbf16, #tpu.memory_space<vmem>>, vector<2x4x8x128xbf16>
    tpu.vector_store %arg7[%c0_37, %c1_38, %c0_39, %c128], %56 {strides = array<i32>} : memref<2x5x9x512xbf16, #tpu.memory_space<vmem>>, vector<2x4x8x128xbf16>,
    %cst_40 = arith.constant 0.000000e+00 : f32
    %58 = vector.broadcast %cst_40 : f32 to vector<64x128xf32>
    %59 = vector.extract_strided_slice %0 {offsets = [0, 0, 0, 0], sizes = [2, 4, 8, 64], strides = [1, 1, 1, 1]} : vector<2x5x9x64xbf16> to vector<2x4x8x64xbf16>
    %60 = vector.shape_cast %59 : vector<2x4x8x64xbf16> to vector<64x64xbf16>
    %c5 = arith.constant 5 : index
    %c0_41 = arith.constant 0 : index
    %c0_42 = arith.constant 0 : index
    %61 = vector.load %arg2[%c5, %c0_41, %c0_42] : memref<9x64x128xbf16, #tpu.memory_space<vmem>>, vector<1x64x128xbf16>
    %62 = vector.shape_cast %61 : vector<1x64x128xbf16> to vector<64x128xbf16>
    %cst_43 = arith.constant dense<0.000000e+00> : vector<64x128xf32>
    %63 = tpu.matmul %60, %62, %cst_43 {dimension_numbers = #tpu.dot_dimension_numbers<[1], [0], [0], [1], [0, 0, 1, 1], [], []>} : vector<64x64xbf16>, vector<64x128xbf16>, vector<64x128xf32> -> vector<64x128xf32>
    %64 = arith.addf %58, %63 : vector<64x128xf32>
    %65 = vector.extract_strided_slice %0 {offsets = [0, 0, 1, 0], sizes = [2, 4, 8, 64], strides = [1, 1, 1, 1]} : vector<2x5x9x64xbf16> to vector<2x4x8x64xbf16>
    %66 = vector.shape_cast %65 : vector<2x4x8x64xbf16> to vector<64x64xbf16>
    %c6 = arith.constant 6 : index
    %c0_44 = arith.constant 0 : index
    %c0_45 = arith.constant 0 : index
    %67 = vector.load %arg2[%c6, %c0_44, %c0_45] : memref<9x64x128xbf16, #tpu.memory_space<vmem>>, vector<1x64x128xbf16>
    %68 = vector.shape_cast %67 : vector<1x64x128xbf16> to vector<64x128xbf16>
    %cst_46 = arith.constant dense<0.000000e+00> : vector<64x128xf32>
    %69 = tpu.matmul %66, %68, %cst_46 {dimension_numbers = #tpu.dot_dimension_numbers<[1], [0], [0], [1], [0, 0, 1, 1], [], []>} : vector<64x64xbf16>, vector<64x128xbf16>, vector<64x128xf32> -> vector<64x128xf32>
    %70 = arith.addf %64, %69 : vector<64x128xf32>
    %71 = vector.extract_strided_slice %0 {offsets = [0, 1, 0, 0], sizes = [2, 4, 8, 64], strides = [1, 1, 1, 1]} : vector<2x5x9x64xbf16> to vector<2x4x8x64xbf16>
    %72 = vector.shape_cast %71 : vector<2x4x8x64xbf16> to vector<64x64xbf16>
    %c7 = arith.constant 7 : index
    %c0_47 = arith.constant 0 : index
    %c0_48 = arith.constant 0 : index
    %73 = vector.load %arg2[%c7, %c0_47, %c0_48] : memref<9x64x128xbf16, #tpu.memory_space<vmem>>, vector<1x64x128xbf16>
    %74 = vector.shape_cast %73 : vector<1x64x128xbf16> to vector<64x128xbf16>
    %cst_49 = arith.constant dense<0.000000e+00> : vector<64x128xf32>
    %75 = tpu.matmul %72, %74, %cst_49 {dimension_numbers = #tpu.dot_dimension_numbers<[1], [0], [0], [1], [0, 0, 1, 1], [], []>} : vector<64x64xbf16>, vector<64x128xbf16>, vector<64x128xf32> -> vector<64x128xf32>
    %76 = arith.addf %70, %75 : vector<64x128xf32>
    %77 = vector.extract_strided_slice %0 {offsets = [0, 1, 1, 0], sizes = [2, 4, 8, 64], strides = [1, 1, 1, 1]} : vector<2x5x9x64xbf16> to vector<2x4x8x64xbf16>
    %78 = vector.shape_cast %77 : vector<2x4x8x64xbf16> to vector<64x64xbf16>
    %c8 = arith.constant 8 : index
    %c0_50 = arith.constant 0 : index
    %c0_51 = arith.constant 0 : index
    %79 = vector.load %arg2[%c8, %c0_50, %c0_51] : memref<9x64x128xbf16, #tpu.memory_space<vmem>>, vector<1x64x128xbf16>
    %80 = vector.shape_cast %79 : vector<1x64x128xbf16> to vector<64x128xbf16>
    %cst_52 = arith.constant dense<0.000000e+00> : vector<64x128xf32>
    %81 = tpu.matmul %78, %80, %cst_52 {dimension_numbers = #tpu.dot_dimension_numbers<[1], [0], [0], [1], [0, 0, 1, 1], [], []>} : vector<64x64xbf16>, vector<64x128xbf16>, vector<64x128xf32> -> vector<64x128xf32>
    %82 = arith.addf %76, %81 : vector<64x128xf32>
    %83 = vector.broadcast %1 : vector<1x128xf32> to vector<64x128xf32>
    %84 = arith.addf %82, %83 : vector<64x128xf32>
    %cst_53 = arith.constant 0.000000e+00 : f32
    %85 = vector.broadcast %cst_53 : f32 to vector<64x128xf32>
    %86 = arith.maximumf %84, %85 : vector<64x128xf32>
    %87 = arith.truncf %86 : vector<64x128xf32> to vector<64x128xbf16>
    %88 = vector.shape_cast %87 : vector<64x128xbf16> to vector<2x4x8x128xbf16>
    %c0_54 = arith.constant 0 : index
    %c1_55 = arith.constant 1 : index
    %c1_56 = arith.constant 1 : index
    %c0_57 = arith.constant 0 : index
    %89 = vector.load %arg7[%c0_54, %c1_55, %c1_56, %c0_57] : memref<2x5x9x512xbf16, #tpu.memory_space<vmem>>, vector<2x4x8x128xbf16>
    tpu.vector_store %arg7[%c0_54, %c1_55, %c1_56, %c0_57], %88 {strides = array<i32>} : memref<2x5x9x512xbf16, #tpu.memory_space<vmem>>, vector<2x4x8x128xbf16>,
    %cst_58 = arith.constant 0.000000e+00 : f32
    %90 = vector.broadcast %cst_58 : f32 to vector<64x128xf32>
    %c0_59 = arith.constant 0 : index
    %c0_60 = arith.constant 0 : index
    %c0_61 = arith.constant 0 : index
    %c0_62 = arith.constant 0 : index
    %91 = vector.load %arg7[%c0_59, %c0_60, %c0_61, %c0_62] : memref<2x5x9x512xbf16, #tpu.memory_space<vmem>>, vector<2x4x8x512xbf16>
    %92 = vector.shape_cast %91 : vector<2x4x8x512xbf16> to vector<64x512xbf16>
    %c0_63 = arith.constant 0 : index
    %c0_64 = arith.constant 0 : index
    %c0_65 = arith.constant 0 : index
    %93 = vector.load %arg4[%c0_63, %c0_64, %c0_65] : memref<4x512x128xbf16, #tpu.memory_space<vmem>>, vector<1x512x128xbf16>
    %94 = vector.shape_cast %93 : vector<1x512x128xbf16> to vector<512x128xbf16>
    %cst_66 = arith.constant dense<0.000000e+00> : vector<64x128xf32>
    %95 = tpu.matmul %92, %94, %cst_66 {dimension_numbers = #tpu.dot_dimension_numbers<[1], [0], [0], [1], [0, 0, 1, 1], [], []>} : vector<64x512xbf16>, vector<512x128xbf16>, vector<64x128xf32> -> vector<64x128xf32>
    %96 = arith.addf %90, %95 : vector<64x128xf32>
    %c0_67 = arith.constant 0 : index
    %c0_68 = arith.constant 0 : index
    %c1_69 = arith.constant 1 : index
    %c0_70 = arith.constant 0 : index
    %97 = vector.load %arg7[%c0_67, %c0_68, %c1_69, %c0_70] : memref<2x5x9x512xbf16, #tpu.memory_space<vmem>>, vector<2x4x8x512xbf16>
    %98 = vector.shape_cast %97 : vector<2x4x8x512xbf16> to vector<64x512xbf16>
    %c1_71 = arith.constant 1 : index
    %c0_72 = arith.constant 0 : index
    %c0_73 = arith.constant 0 : index
    %99 = vector.load %arg4[%c1_71, %c0_72, %c0_73] : memref<4x512x128xbf16, #tpu.memory_space<vmem>>, vector<1x512x128xbf16>
    %100 = vector.shape_cast %99 : vector<1x512x128xbf16> to vector<512x128xbf16>
    %cst_74 = arith.constant dense<0.000000e+00> : vector<64x128xf32>
    %101 = tpu.matmul %98, %100, %cst_74 {dimension_numbers = #tpu.dot_dimension_numbers<[1], [0], [0], [1], [0, 0, 1, 1], [], []>} : vector<64x512xbf16>, vector<512x128xbf16>, vector<64x128xf32> -> vector<64x128xf32>
    %102 = arith.addf %96, %101 : vector<64x128xf32>
    %c0_75 = arith.constant 0 : index
    %c1_76 = arith.constant 1 : index
    %c0_77 = arith.constant 0 : index
    %c0_78 = arith.constant 0 : index
    %103 = vector.load %arg7[%c0_75, %c1_76, %c0_77, %c0_78] : memref<2x5x9x512xbf16, #tpu.memory_space<vmem>>, vector<2x4x8x512xbf16>
    %104 = vector.shape_cast %103 : vector<2x4x8x512xbf16> to vector<64x512xbf16>
    %c2_79 = arith.constant 2 : index
    %c0_80 = arith.constant 0 : index
    %c0_81 = arith.constant 0 : index
    %105 = vector.load %arg4[%c2_79, %c0_80, %c0_81] : memref<4x512x128xbf16, #tpu.memory_space<vmem>>, vector<1x512x128xbf16>
    %106 = vector.shape_cast %105 : vector<1x512x128xbf16> to vector<512x128xbf16>
    %cst_82 = arith.constant dense<0.000000e+00> : vector<64x128xf32>
    %107 = tpu.matmul %104, %106, %cst_82 {dimension_numbers = #tpu.dot_dimension_numbers<[1], [0], [0], [1], [0, 0, 1, 1], [], []>} : vector<64x512xbf16>, vector<512x128xbf16>, vector<64x128xf32> -> vector<64x128xf32>
    %108 = arith.addf %102, %107 : vector<64x128xf32>
    %c0_83 = arith.constant 0 : index
    %c1_84 = arith.constant 1 : index
    %c1_85 = arith.constant 1 : index
    %c0_86 = arith.constant 0 : index
    %109 = vector.load %arg7[%c0_83, %c1_84, %c1_85, %c0_86] : memref<2x5x9x512xbf16, #tpu.memory_space<vmem>>, vector<2x4x8x512xbf16>
    %110 = vector.shape_cast %109 : vector<2x4x8x512xbf16> to vector<64x512xbf16>
    %c3_87 = arith.constant 3 : index
    %c0_88 = arith.constant 0 : index
    %c0_89 = arith.constant 0 : index
    %111 = vector.load %arg4[%c3_87, %c0_88, %c0_89] : memref<4x512x128xbf16, #tpu.memory_space<vmem>>, vector<1x512x128xbf16>
    %112 = vector.shape_cast %111 : vector<1x512x128xbf16> to vector<512x128xbf16>
    %cst_90 = arith.constant dense<0.000000e+00> : vector<64x128xf32>
    %113 = tpu.matmul %110, %112, %cst_90 {dimension_numbers = #tpu.dot_dimension_numbers<[1], [0], [0], [1], [0, 0, 1, 1], [], []>} : vector<64x512xbf16>, vector<512x128xbf16>, vector<64x128xf32> -> vector<64x128xf32>
    %114 = arith.addf %108, %113 : vector<64x128xf32>
    %c0_91 = arith.constant 0 : index
    %c0_92 = arith.constant 0 : index
    %115 = vector.load %arg5[%c0_91, %c0_92] : memref<1x128xf32, #tpu.memory_space<vmem>>, vector<1x128xf32>
    %116 = vector.broadcast %115 : vector<1x128xf32> to vector<64x128xf32>
    %117 = arith.addf %114, %116 : vector<64x128xf32>
    %cst_93 = arith.constant 0.000000e+00 : f32
    %118 = vector.broadcast %cst_93 : f32 to vector<64x128xf32>
    %119 = arith.maximumf %117, %118 : vector<64x128xf32>
    %c0_94 = arith.constant 0 : index
    %c0_95 = arith.constant 0 : index
    %120 = vector.load %arg6[%c0_94, %c0_95] : memref<64x128xf32, #tpu.memory_space<vmem>>, vector<64x128xf32>
    tpu.vector_store %arg6[%c0_94, %c0_95], %119 {strides = array<i32>} : memref<64x128xf32, #tpu.memory_space<vmem>>, vector<64x128xf32>,
    return
  }
  func.func @transform_0(%arg0: i32) -> (i32, i32, i32, i32) {
    %c0_i32 = arith.constant 0 : i32
    %c0_i32_0 = arith.constant 0 : i32
    %c0_i32_1 = arith.constant 0 : i32
    %c0_i32_2 = arith.constant 0 : i32
    %c0_i32_3 = arith.constant 0 : i32
    return %c0_i32, %c0_i32_0, %c0_i32_1, %c0_i32_2 : i32, i32, i32, i32
  }
  func.func @transform_1(%arg0: i32) -> (i32, i32, i32) {
    %c0_i32 = arith.constant 0 : i32
    %c0_i32_0 = arith.constant 0 : i32
    %c0_i32_1 = arith.constant 0 : i32
    %c0_i32_2 = arith.constant 0 : i32
    return %c0_i32, %c0_i32_0, %c0_i32_1 : i32, i32, i32
  }
  func.func @transform_2(%arg0: i32) -> (i32, i32) {
    %c0_i32 = arith.constant 0 : i32
    %c0_i32_0 = arith.constant 0 : i32
    %c0_i32_1 = arith.constant 0 : i32
    return %c0_i32, %c0_i32_0 : i32, i32
  }
  func.func @transform_3(%arg0: i32) -> (i32, i32, i32) {
    %c0_i32 = arith.constant 0 : i32
    %c0_i32_0 = arith.constant 0 : i32
    %c0_i32_1 = arith.constant 0 : i32
    %c0_i32_2 = arith.constant 0 : i32
    return %c0_i32, %c0_i32_0, %c0_i32_1 : i32, i32, i32
  }
  func.func @transform_4(%arg0: i32) -> (i32, i32) {
    %c0_i32 = arith.constant 0 : i32
    %c0_i32_0 = arith.constant 0 : i32
    %c0_i32_1 = arith.constant 0 : i32
    return %c0_i32, %c0_i32_0 : i32, i32
  }
  func.func @transform_5(%arg0: i32) -> (i32, i32) {
    %c0_i32 = arith.constant 0 : i32
    %c0_i32_0 = arith.constant 0 : i32
    %c0_i32_1 = arith.constant 0 : i32
    return %c0_i32, %c0_i32_0 : i32, i32
  }
}

</mosaic_0001>

<bundles_post_ra>
// kernel: forward.1
= control target key start
LH: loop header
LB: loop body
LE: loop exit
PB: predicated region body
PF: predicated region fallthrough
CT: control target
= control target key end

     0   :  { %vm322_vm0 = vsmask.f32 3328  ;;  %vm323_vm1 = vsmask.f32 7440  ;;  %vm187_vm2 = vcmask 523264   ;;  %vm44_vm4 = vcmask 1040384   ;;  %s6882_s1 = inlined_call_operand.vmem [shape: bf16[9,64,128], index: 1, kind: input, shape index: {}]   ;;  %s6883_s0 = inlined_call_operand.vmem [shape: bf16[2,5,9,64], index: 0, kind: input, shape index: {}]   ;;  %s6884_s3 = inlined_call_operand.vmem [shape: bf16[4,512,128], index: 3, kind: input, shape index: {}]   ;;  %s6885_s2 = inlined_call_operand.vmem [shape: f32[1,128], index: 2, kind: input, shape index: {}]   ;;  %s6886_s4 = inlined_call_operand.vmem [shape: f32[1,128], index: 4, kind: input, shape index: {}]   ;;  %s6887_s5 = inlined_call_operand.vmem [shape: f32[64,128], index: 5, kind: output, shape index: {}]  }
   0x1   :  { %v5323_v0 = vld [vmem:[%s6882_s1 + $0x40] sm:$0xff]   ;;  %v5324_v1 = vld [vmem:[%s6882_s1 + $0x48] sm:$0xff]   ;;  %v5325_v2 = vld [vmem:[%s6882_s1 + $0x50] sm:$0xff]   ;;  %vm47_vm5 = vcmask 1044484   ;;  %vm45_vm6 = vsmask.f32 256 }
   0x2   :  { %5138 = vmatprep.subr.bf16.mxu1 %v5323_v0  ;;  %v21_v3 = vld [vmem:[%s6883_s0] sm:$0xf]  ;;  %v22_v4 = vld [vmem:[%s6883_s0 + $0x4] sm:$0x1]  ;;  %v5548_v5 = vld [vmem:[%s6883_s0 + $0x8] sm:$0xf] }
   0x3   :  { %5139 = vmatpush3.bf16.msra.mxu1 %v5323_v0  ;;  %v24_v6 = vld [vmem:[%s6883_s0 + $0xc] sm:$0x1]  ;;  %v5556_v7 = vld [vmem:[%s6883_s0 + $0x10] sm:$0xf]  ;;  %v5559_v8 = vcombine.low %v21_v3, %v5548_v5  ;;  %v5326_v9 = vld [vmem:[%s6882_s1 + $0x58] sm:$0xff]   ;;  %v326_v13 = vshrl.u32 %v21_v3, 16 }
   0x4   :  { %5140 = vmatprep.subr.bf16.mxu1 %v5324_v1  ;;  %v26_v10 = vld [vmem:[%s6883_s0 + $0x14] sm:$0x1]  ;;  %v5570_v11 = vld [vmem:[%s6883_s0 + $0x18] sm:$0xf]  ;;  %v28_v12 = vld [vmem:[%s6883_s0 + $0x1c] sm:$0x1] }
   0x5   :  { %v329_v14 = vshll.u32 %v21_v3, 16  ;;  %v335_v15 = vshll.u32 %v22_v4, 16  ;;  %v340_v16 = vshrl.u32 %v5548_v5, 16  ;;  %5130 = vmatprep.mubr.msk.bf16.mxu0 %vm187_vm2, %v5559_v8  ;;  %v343_v17 = vshll.u32 %v5548_v5, 16  ;;  %v5584_v21 = vld [vmem:[%s6883_s0 + $0x20] sm:$0xf]  ;;  %vm5601_vm3 = vmor %vm322_vm0, %vm323_vm1 }
   0x6   :  { %v349_v18 = vshll.u32 %v24_v6, 16  ;;  %v354_v19 = vshrl.u32 %v5556_v7, 16  ;;  %v357_v20 = vshll.u32 %v5556_v7, 16  ;;  %v328_v22 = vrot.slane %v326_v13, 4  ;;  %v30_v26 = vld [vmem:[%s6883_s0 + $0x24] sm:$0x1]  ;;  %vm5798_vm7 = vmand %vm44_vm4, %vm45_vm6 }
   0x7   :  { %5141 = vmatpush3.bf16.msra.mxu1 %v5324_v1  ;;  %v331_v23 = vrot.slane %v329_v14, 5  ;;  %v337_v24 = vrot.slane %v335_v15, 5  ;;  %v342_v25 = vrot.slane %v340_v16, 4  ;;  %v345_v27 = vrot.slane %v343_v17, 5  ;;  %v5592_v31 = vld [vmem:[%s6882_s1 + $0x20] sm:$0xff]   ;;  %v5328_v4 = vld [vmem:[%s6882_s1 + $0x28] sm:$0xff]  }
   0x8   :  { %5142 = vmatprep.subr.bf16.mxu1 %v5325_v2  ;;  %v351_v28 = vrot.slane %v349_v18, 5  ;;  %v356_v29 = vrot.slane %v354_v19, 4  ;;  %v359_v30 = vrot.slane %v357_v20, 5  ;;  %v363_v33 = vshll.u32 %v26_v10, 16  ;;  %v5329_v36 = vld [vmem:[%s6882_s1] sm:$0xff]   ;;  %v5331_v13 = vld [vmem:[%s6882_s1 + $0x8] sm:$0xff]  }
   0x9   :  { %v332_v32 = vor.u32 %v331_v23, %v328_v22  ;;  %v368_v34 = vshrl.u32 %v5570_v11, 16  ;;  %v371_v35 = vshll.u32 %v5570_v11, 16  ;;  %v346_v38 = vor.u32 %v345_v27, %v342_v25  ;;  %5122 = vmatprep.subr.bf16.mxu0 %v5329_v36  ;;  %v5609_v50 = vld [vmem:[%s6883_s0 + $0x28] sm:$0xf]  ;;  %v32_v55 = vld [vmem:[%s6883_s0 + $0x2c] sm:$0x1] }
   0xa   :  { %v360_v39 = vor.u32 %v359_v30, %v356_v29  ;;  %v377_v40 = vshll.u32 %v28_v12, 16  ;;  %v1395_v41 = vshrl.u32 %v5584_v21, 16  ;;  %v365_v43 = vrot.slane %v363_v33, 5  ;;  %5123 = vmatpush3.bf16.msra.mxu0 %v5329_v36  ;;  %v5629_v58 = vld [vmem:[%s6883_s0 + $0x30] sm:$0xf] }
   0xb   :  { %5143 = vmatpush3.bf16.msra.mxu1 %v5325_v2  ;;  %v333_v42 = vrot.slane %v332_v32, 4  ;;  %v370_v44 = vrot.slane %v368_v34, 4  ;;  %v373_v45 = vrot.slane %v371_v35, 5  ;;  %v347_v46 = vrot.slane %v346_v38, 4  ;;  %v34_v59 = vld [vmem:[%s6883_s0 + $0x34] sm:$0x1]  ;;  %5124 = vmatprep.subr.bf16.mxu0 %v5331_v13 }
   0xc   :  { %5144 = vmatprep.subr.bf16.mxu1 %v5326_v9  ;;  %v361_v47 = vrot.slane %v360_v39, 4  ;;  %v379_v48 = vrot.slane %v377_v40, 5  ;;  %v1397_v49 = vrot.slane %v1395_v41, 4  ;;  %v1398_v53 = vshll.u32 %v5584_v21, 16  ;;  %v5642_v2 = vld [vmem:[%s6883_s0 + $0x38] sm:$0xf] }
   0xd   :  { %v338_v51 = vsel %vm5601_vm3, %v333_v42, %v337_v24  ;;  %v374_v52 = vor.u32 %v373_v45, %v370_v44  ;;  %v1404_v54 = vshll.u32 %v30_v26, 16  ;;  %v5619_v56 = vsel %vm5601_vm3, %v347_v46, %v351_v28  ;;  %v36_v12 = vld [vmem:[%s6883_s0 + $0x3c] sm:$0x1]  ;;  %v5664_v18 = vld [vmem:[%s6883_s0 + $0x40] sm:$0xf]  ;;  %v5333_v39 = vld [vmem:[%s6882_s1 + $0x10] sm:$0xff]  }
   0xe   :  { %v5623_v57 = vsel %vm5601_vm3, %v361_v47, %v365_v43  ;;  %v382_v60 = vshrl.u32 %v5609_v50, 16  ;;  %v385_v61 = vshll.u32 %v5609_v50, 16  ;;  %v5637_v63 = vcombine.low %v338_v51, %v5619_v56  ;;  %v38_v24 = vld [vmem:[%s6883_s0 + $0x44] sm:$0x1]  ;;  %5125 = vmatpush3.bf16.msra.mxu0 %v5331_v13  ;;  %v5330_v43 = vld [vmem:[%s6882_s1 + $0x30] sm:$0xff]  }
   0xf   :  { %5145 = vmatpush3.bf16.msra.mxu1 %v5326_v9  ;;  %v375_v62 = vrot.slane %v374_v52, 4  ;;  %v1400_v0 = vrot.slane %v1398_v53, 5  ;;  %v1406_v1 = vrot.slane %v1404_v54, 5  ;;  %v4293_v3 = vcombine.low %v5619_v56, %v5623_v57  ;;  %5126 = vmatprep.subr.bf16.mxu0 %v5333_v39  ;;  %v5332_v52 = vld [vmem:[%s6882_s1 + $0x38] sm:$0xff]  }
  0x10   :  { %5154 = vmatprep.subr.bf16.mxu1 %v5592_v31  ;;  %v384_v6 = vrot.slane %v382_v60, 4  ;;  %v387_v9 = vrot.slane %v385_v61, 5  ;;  %v391_v10 = vshll.u32 %v32_v55, 16  ;;  %5146 = vmatprep.mubr.msk.bf16.mxu1 %vm187_vm2, %v5637_v63  ;;  %v396_v16 = vshrl.u32 %v5629_v58, 16  ;;  %v5337_v53 = vld [vmem:[%s6882_s1 + $0x18] sm:$0xff]  }
  0x11   :  { %v380_v14 = vsel %vm5601_vm3, %v375_v62, %v379_v48  ;;  %v1401_v15 = vor.u32 %v1400_v0, %v1397_v49  ;;  %v399_v17 = vshll.u32 %v5629_v58, 16  ;;  %v405_v23 = vshll.u32 %v34_v59, 16 }
  0x12   :  { %v5667_v19 = vcombine.low %v5623_v57, %v380_v14  ;;  %v388_v20 = vor.u32 %v387_v9, %v384_v6  ;;  %v393_v22 = vrot.slane %v391_v10, 5  ;;  %v398_v26 = vrot.slane %v396_v16, 4  ;;  %5127 = vmatpush3.bf16.msra.mxu0 %v5333_v39  ;;  %v5345_v10 = vld [vmem:[%s6882_s1 + $0x80] sm:$0xff]   ;;  %v5338_v16 = vld [vmem:[%s6882_s1 + $0xc8] sm:$0xff]  }
  0x13   :  { %v1402_v25 = vrot.slane %v1401_v15, 4  ;;  %v401_v27 = vrot.slane %v399_v17, 5  ;;  %v410_v28 = vshrl.u32 %v5642_v2, 16  ;;  %v407_v30 = vrot.slane %v405_v23, 5  ;;  %5128 = vmatprep.subr.bf16.mxu0 %v5337_v53  ;;  %v5349_v15 = vld [vmem:[%s6882_s1 + $0x90] sm:$0xff]   ;;  %v5355_v23 = vld [vmem:[%s6882_s1 + $0x60] sm:$0xff]  }
  0x14   :  { %5147 = vmatmul.mubr.msk.bf16.vlgmr.msra.gmra.mrb[0].mxu1 %vm187_vm2, %v5667_v19  ;;  %v389_v29 = vrot.slane %v388_v20, 4  ;;  %v413_v32 = vshll.u32 %v5642_v2, 16  ;;  %v419_v33 = vshll.u32 %v36_v12, 16  ;;  %v424_v38 = vshrl.u32 %v5664_v18, 16 }
  0x15   :  { %v1407_v34 = vsel %vm5601_vm3, %v1402_v25, %v1406_v1  ;;  %5155 = vmatpush3.bf16.msra.mxu1 %v5592_v31  ;;  %v402_v35 = vor.u32 %v401_v27, %v398_v26  ;;  %v412_v36 = vrot.slane %v410_v28, 4  ;;  %v427_v45 = vshll.u32 %v5664_v18, 16  ;;  %v5342_v27 = vld [vmem:[%s6882_s1 + $0xd8] sm:$0xff]  }
  0x16   :  { %v5683_v40 = vcombine.low %v380_v14, %v1407_v34  ;;  %5156 = vmatprep.subr.bf16.mxu1 %v5328_v4  ;;  %v394_v41 = vsel %vm5601_vm3, %v389_v29, %v393_v22  ;;  %v415_v42 = vrot.slane %v413_v32, 5  ;;  %v426_v44 = vrot.slane %v424_v38, 4  ;;  %5129 = vmatpush3.bf16.msra.mxu0 %v5337_v53  ;;  %v5341_v22 = vld [vmem:[%s6882_s1 + $0xd0] sm:$0xff]   ;;  %v5357_v29 = vld [vmem:[%s6882_s1 + $0x68] sm:$0xff]   ;;  %v70_v34 = vld [vmem:[#allocation2 + $0x58] sm:$0x11] }
  0x17   :  { %v403_v31 = vrot.slane %v402_v35, 4  ;;  %v433_v46 = vshll.u32 %v38_v24, 16  ;;  %v421_v48 = vrot.slane %v419_v33, 5  ;;  %v429_v51 = vrot.slane %v427_v45, 5  ;;  %5170 = vmatprep.subr.bf16.mxu0 %v5345_v10  ;;  %v40_v32 = vld [vmem:[%s6883_s0 + $0x4c] sm:$0x1] }
  0x18   :  { %v416_v47 = vor.u32 %v415_v42, %v412_v36  ;;  %v5712_v0 = vcombine.low %v5556_v7, %v5570_v11  ;;  %v5721_v6 = vcombine.low %v5609_v50, %v5629_v58  ;;  %v5347_v50 = vld [vmem:[%s6882_s1 + $0x88] sm:$0xff]   ;;  %v5747_v13 = vcombine.low %v5548_v5, %v5556_v7  ;;  %v5351_v5 = vld [vmem:[%s6882_s1 + $0x98] sm:$0xff]   ;;  %v5361_v36 = vld [vmem:[%s6882_s1 + $0x70] sm:$0xff]  }
  0x19   :  { %5157 = vmatpush3.bf16.msra.mxu1 %v5328_v4  ;;  %v5693_v49 = vsel %vm5601_vm3, %v403_v31, %v407_v30  ;;  %v435_v59 = vrot.slane %v433_v46, 5  ;;  %v430_v60 = vor.u32 %v429_v51, %v426_v44  ;;  %v5336_v4 = vld [vmem:[%s6882_s1 + $0xc0] sm:$0xff]   ;;  %v5751_v14 = vcombine.low %v5642_v2, %v5664_v18  ;;  %v39_v7 = vld [vmem:[%s6883_s0 + $0x48] sm:$0xf]  ;;  %v5346_v31 = vld [vmem:[%s6882_s1 + $0xb0] sm:$0xff]  }
  0x1a   :  { %v5702_v54 = vcombine.low %v394_v41, %v5693_v49  ;;  %v417_v55 = vrot.slane %v416_v47, 4  ;;  %5158 = vmatprep.subr.bf16.mxu1 %v5330_v43  ;;  %5131 = vmatmul.mubr.msk.bf16.vlgmr.msra.gmra.mrb[0].mxu0 %vm187_vm2, %v5712_v0  ;;  %v1409_v17 = vshrl.u32 %v39_v7, 16  ;;  %v1412_v20 = vshll.u32 %v39_v7, 16  ;;  %v5344_v41 = vld [vmem:[%s6882_s1 + $0xa8] sm:$0xff]   ;;  %v5359_v45 = vld [vmem:[%s6882_s1 + $0xf8] sm:$0xff]   ;;  %v5362_v46 = vld [vmem:[%s6882_s1 + $0x100] sm:$0xff]  }
  0x1b   :  { %v431_v62 = vrot.slane %v430_v60, 4  ;;  %5134 = vmatprep.mubr.msk.bf16.mxu0 %vm187_vm2, %v5721_v6  ;;  %5171 = vmatpush3.bf16.msra.mxu0 %v5345_v10  ;;  %v5784_v28 = vcombine.low %v5570_v11, %v5584_v21  ;;  %v5791_v30 = vcombine.low %v5629_v58, %v5642_v2  ;;  %v1418_v21 = vshll.u32 %v40_v32, 16  ;;  %v5343_v58 = vld [vmem:[%s6882_s1 + $0xa0] sm:$0xff]   ;;  %v5353_v44 = vld [vmem:[%s6882_s1 + $0xe8] sm:$0xff]   ;;  %v5366_v51 = vld [vmem:[%s6882_s1 + $0x118] sm:$0xff]  }
  0x1c   :  { %5150 = vmatprep.mubr.msk.bf16.mxu1 %vm187_vm2, %v5702_v54  ;;  %v5708_v61 = vsel %vm5601_vm3, %v417_v55, %v421_v48  ;;  %5172 = vmatprep.subr.bf16.mxu0 %v5347_v50  ;;  %v1411_v24 = vrot.slane %v1409_v17, 4  ;;  %v1414_v25 = vrot.slane %v1412_v20, 5  ;;  %vm48_vm8 = vsmask.f32 4352  ;;  %v5364_v47 = vld [vmem:[%s6882_s1 + $0x108] sm:$0xff]   ;;  %v5365_v48 = vld [vmem:[%s6882_s1 + $0x110] sm:$0xff]  }
  0x1d   :  { %5159 = vmatpush3.bf16.msra.mxu1 %v5330_v43  ;;  %v4295_v1 = vcombine.low %v5693_v49, %v5708_v61  ;;  %v5725_v9 = vsel %vm5601_vm3, %v431_v62, %v435_v59  ;;  %vm49_vm9 = vmand %vm47_vm5, %vm48_vm8  ;;  %v1420_v2 = vrot.slane %v1418_v21, 5  ;;  %v4212_v42 = vcombine.low %v5664_v18, %v39_v7  ;;  %v5363_v43 = vld [vmem:[%s6882_s1 + $0x78] sm:$0xff]   ;;  %v5370_v10 = vld [vmem:[%s6884_s3 + $0x8] sm:$0xff]  }
  0x1e   :  { %5160 = vmatprep.subr.bf16.mxu1 %v5332_v52  ;;  %v5734_v12 = vcombine.low %v5708_v61, %v5725_v9  ;;  %v1415_v26 = vor.u32 %v1414_v25, %v1411_v24  ;;  %vm5811_vm10 = vmor %vm49_vm9, %vm5798_vm7  ;;  %v5348_v18 = vld [vmem:[%s6882_s1 + $0xb8] sm:$0xff]   ;;  %v5499_v56 = vmov 0   ;;  %v83_v20 = vld [vmem:[#allocation2 + $0x90] sm:$0x11]  ;;  %vm768_vm11 = vcmask 1043456  }
  0x1f   :  { %5173 = vmatpush3.bf16.msra.mxu0 %v5347_v50  ;;  %66 = vst [vmem:[#allocation2 + $0x48] sm:$0xff] %v5499_v56  ;;  %42 = vst [vmem:[#allocation2] sm:$0xff] %v5499_v56  ;;  %v110_v49 = vld [vmem:[#allocation2 + $0xf8] sm:$0x11]  ;;  %v84_v24 = vsel %vm5811_vm10, 0, %v83_v20  ;;  %v5382_v32 = vld [vmem:[%s6884_s3 + $0x110] sm:$0xff]  }
  0x20   :  { %5151 = vmatmul.mubr.msk.bf16.gmra.mrb[4].mxu1 %vm187_vm2, %v5734_v12  ;;  %5174 = vmatprep.subr.bf16.mxu0 %v5349_v15  ;;  %v1416_v11 = vrot.slane %v1415_v26, 4  ;;  %43 = vst [vmem:[#allocation2 + $0x8] sm:$0xff] %v5499_v56  ;;  %57 = vst [vmem:[#allocation2 + $0x20] sm:$0xff] %v5499_v56  ;;  %v111_v55 = vsel %vm5811_vm10, 0, %v110_v49  ;;  %v94_v59 = vld [vmem:[#allocation2 + $0xb8] sm:$0x11] }
  0x21   :  { %5161 = vmatpush3.bf16.msra.mxu1 %v5332_v52  ;;  %5162 = vmatprep.mubr.msk.bf16.mxu1 %vm187_vm2, %v5559_v8  ;;  %v54_v52 = vld [vmem:[#allocation2 + $0x18] sm:$0x11]  ;;  %58 = vst [vmem:[#allocation2 + $0x28] sm:$0xff] %v5499_v56  ;;  %65 = vst [vmem:[#allocation2 + $0x40] sm:$0xff] %v5499_v56  ;;  %v95_v60 = vsel %vm5811_vm10, 0, %v94_v59  ;;  %v5378_v26 = vld [vmem:[%s6884_s3 + $0x108] sm:$0xff]  }
  0x22   :  { %5202 = vmatprep.subr.bf16.mxu1 %v5336_v4  ;;  %5135 = vmatmul.mubr.msk.bf16.gmra.mrb[4].mxu0 %vm187_vm2, %v5751_v14  ;;  %v1421_v38 = vsel %vm5601_vm3, %v1416_v11, %v1420_v2  ;;  %v55_v53 = vsel %vm5811_vm10, 0, %v54_v52  ;;  %73 = vst [vmem:[#allocation2 + $0x60] sm:$0xff] %v5499_v56  ;;  %74 = vst [vmem:[#allocation2 + $0x68] sm:$0xff] %v5499_v56  ;;  %v118_v61 = vld [vmem:[#allocation2 + $0x118] sm:$0x11]  ;;  %v5395_v52 = vld [vmem:[%s6884_s3 + $0x240] sm:$0xff]  }
  0x23   :  { %5178 = vmatprep.mubr.msk.bf16.mxu0 %vm187_vm2, %v5747_v13  ;;  %5175 = vmatpush3.bf16.msra.mxu0 %v5349_v15  ;;  %v4296_v39 = vcombine.low %v5725_v9, %v1421_v38  ;;  %81 = vst [vmem:[#allocation2 + $0x80] sm:$0xff] %v5499_v56  ;;  %90 = vst [vmem:[#allocation2 + $0xa8] sm:$0xff] %v5499_v56  ;;  %v119_v62 = vsel %vm5811_vm10, 0, %v118_v61  ;;  %v5369_v9 = vld [vmem:[%s6884_s3 + $0x48] sm:$0xff]   ;;  %v5373_v15 = vld [vmem:[%s6884_s3 + $0x10] sm:$0xff]  }
  0x24   :  { %5176 = vmatprep.subr.bf16.mxu0 %v5351_v5  ;;  %97 = vst [vmem:[#allocation2 + $0xc0] sm:$0xff] %v5499_v56  ;;  %98 = vst [vmem:[#allocation2 + $0xc8] sm:$0xff] %v5499_v56  ;;  %v5375_v7 = vld [vmem:[%s6884_s3 + $0x58] sm:$0xff]   ;;  %v67_v25 = vld [vmem:[#allocation2 + $0x50] sm:$0x11] }
  0x25   :  { %105 = vst [vmem:[#allocation2 + $0xe0] sm:$0xff] %v5499_v56  ;;  %106 = vst [vmem:[#allocation2 + $0xe8] sm:$0xff] %v5499_v56  ;;  %v115_v11 = vld [vmem:[#allocation2 + $0x110] sm:$0x11]  ;;  %v5404_v49 = vld [vmem:[%s6884_s3 + $0x1c0] sm:$0xff]  }
  0x26   :  { %113 = vst [vmem:[#allocation2 + $0x100] sm:$0xff] %v5499_v56  ;;  %114 = vst [vmem:[#allocation2 + $0x108] sm:$0xff] %v5499_v56  ;;  %v116_v21 = vsel %vm5811_vm10, 0, %v115_v11  ;;  %vm769_vm12 = vsmask.f32 7938  ;;  %v5403_v33 = vld [vmem:[%s6884_s3 + $0x250] sm:$0xff]  }
  0x27   :  { %5177 = vmatpush3.bf16.msra.mxu0 %v5351_v5  ;;  %121 = vst [vmem:[#allocation2 + $0x120] sm:$0xff] %v5499_v56  ;;  %56 = vst [vmem:[#allocation2 + $0x18] sm:$0x11] %v55_v53  ;;  %v59_v5 = vld [vmem:[#allocation2 + $0x30] sm:$0x11]  ;;  %v5400_v56 = vld [vmem:[%s6884_s3 + $0x178] sm:$0xff]  }
  0x28   :  { %5163 = vmatmul.mubr.msk.bf16.vlgmr.msra.gmra.mrb[0].mxu1 %vm187_vm2, %v5712_v0  ;;  %5186 = vmatprep.subr.bf16.mxu0 %v5355_v23  ;;  %112 = vst [vmem:[#allocation2 + $0xf8] sm:$0x11] %v111_v55  ;;  %96 = vst [vmem:[#allocation2 + $0xb8] sm:$0x11] %v95_v60  ;;  %v60_v17 = vsel %vm5811_vm10, 0, %v59_v5  ;;  %v5396_v53 = vld [vmem:[%s6884_s3 + $0x170] sm:$0xff]  }
  0x29   :  { %5203 = vmatpush3.bf16.msra.mxu1 %v5336_v4  ;;  %5166 = vmatprep.mubr.msk.bf16.mxu1 %vm187_vm2, %v5721_v6  ;;  %120 = vst [vmem:[#allocation2 + $0x118] sm:$0x11] %v119_v62  ;;  %v5367_v4 = vld [vmem:[%s6884_s3 + $0x40] sm:$0xff]   ;;  %61 = vst [vmem:[#allocation2 + $0x30] sm:$0x11] %v60_v17 }
  0x2a   :  { %5204 = vmatprep.subr.bf16.mxu1 %v5338_v16  ;;  %5179 = vmatmul.mubr.msk.bf16.vlgmr.msra.gmra.mrb[8].mxu0 %vm187_vm2, %v5784_v28  ;;  %85 = vst [vmem:[#allocation2 + $0x90] sm:$0x11] %v84_v24  ;;  %117 = vst [vmem:[#allocation2 + $0x110] sm:$0x11] %v116_v21  ;;  %v6042_v55 = vld [vmem:[%s6885_s2] ss:$0 sm:$0xff] }
  0x2b   :  { %5187 = vmatpush3.bf16.msra.mxu0 %v5355_v23  ;;  %5182 = vmatprep.mubr.msk.bf16.mxu0 %vm187_vm2, %v5791_v30  ;;  %v5377_v23 = vld [vmem:[%s6884_s3 + $0x18] sm:$0xff]   ;;  %vm6059_vm13 = vmand %vm768_vm11, %vm769_vm12 }
  0x2c   :  { %5188 = vmatprep.subr.bf16.mxu0 %v5357_v29 }
  0x2d   :  { %5205 = vmatpush3.bf16.msra.mxu1 %v5338_v16  ;;  %v5374_v16 = vld [vmem:[%s6884_s3 + $0x100] sm:$0xff]  }
  0x2e   :  { %5206 = vmatprep.subr.bf16.mxu1 %v5341_v22 }
  0x2f   :  { %5189 = vmatpush3.bf16.msra.mxu0 %v5357_v29  ;;  %v5380_v29 = vld [vmem:[%s6884_s3 + $0x150] sm:$0xff]  }
  0x30   :  { %5167 = vmatmul.mubr.msk.bf16.gmra.mrb[4].mxu1 %vm187_vm2, %v5751_v14  ;;  %5190 = vmatprep.subr.bf16.mxu0 %v5361_v36 }
  0x31   :  { %5207 = vmatpush3.bf16.msra.mxu1 %v5341_v22  ;;  %5210 = vmatprep.mubr.msk.bf16.mxu1 %vm187_vm2, %v5637_v63  ;;  %v71_v63 = vsel %vm5811_vm10, 0, %v70_v34  ;;  %v5376_v22 = vld [vmem:[%s6884_s3 + $0x148] sm:$0xff]   ;;  %v99_v34 = vld [vmem:[#allocation2 + $0xd0] sm:$0x11] }
  0x32   :  { %5208 = vmatprep.subr.bf16.mxu1 %v5342_v27  ;;  %72 = vst [vmem:[#allocation2 + $0x58] sm:$0x11] %v71_v63  ;;  %5183 = vmatmul.mubr.msk.bf16.gmra.mrb[12].mxu0 %vm187_vm2, %v4212_v42  ;;  %v100_v2 = vsel %vm5811_vm10, 0, %v99_v34  ;;  %v123_v63 = vld [vmem:[#allocation2 + $0x130] sm:$0x11] }
  0x33   :  { %5191 = vmatpush3.bf16.msra.mxu0 %v5361_v36  ;;  %5194 = vmatprep.mubr.msk.bf16.mxu0 %vm187_vm2, %v5559_v8  ;;  %v5384_v36 = vld [vmem:[%s6884_s3 + $0x158] sm:$0xff]   ;;  %101 = vst [vmem:[#allocation2 + $0xd0] sm:$0x11] %v100_v2  ;;  %v124_v38 = vsel %vm5811_vm10, 0, %v123_v63 }
  0x34   :  { %5192 = vmatprep.subr.bf16.mxu0 %v5363_v43  ;;  %125 = vst [vmem:[#allocation2 + $0x130] sm:$0x11] %v124_v38 }
  0x35   :  { %5209 = vmatpush3.bf16.msra.mxu1 %v5342_v27  ;;  %v68_v27 = vsel %vm5811_vm10, 0, %v67_v25 }
  0x36   :  { %5218 = vmatprep.subr.bf16.mxu1 %v5343_v58  ;;  %69 = vst [vmem:[#allocation2 + $0x50] sm:$0x11] %v68_v27 }
  0x37   :  { %5193 = vmatpush3.bf16.msra.mxu0 %v5363_v43  ;;  %v5386_v43 = vld [vmem:[%s6884_s3 + $0x118] sm:$0xff]  }
  0x38   :  { %5211 = vmatmul.mubr.msk.bf16.vlgmr.msra.gmra.mrb[8].mxu1 %vm187_vm2, %v5667_v19  ;;  %v5350_v19 = vld [vmem:[%s6882_s1 + $0xe0] sm:$0xff]  }
  0x39   :  { %5219 = vmatpush3.bf16.msra.mxu1 %v5343_v58  ;;  %5214 = vmatprep.mubr.msk.bf16.mxu1 %vm187_vm2, %v5702_v54  ;;  %v78_v54 = vld [vmem:[#allocation2 + $0x78] sm:$0x11]  ;;  %v5383_v58 = vld [vmem:[%s6884_s3 + $0x68] sm:$0xff]  }
  0x3a   :  { %5220 = vmatprep.subr.bf16.mxu1 %v5344_v41  ;;  %5195 = vmatmul.mubr.msk.bf16.vlgmr.msra.gmra.mrb[8].mxu0 %vm187_vm2, %v5712_v0  ;;  %v79_v57 = vsel %vm5811_vm10, 0, %v78_v54  ;;  %v5398_v54 = vld [vmem:[%s6884_s3 + $0x130] sm:$0xff]  }
  0x3b   :  { %5198 = vmatprep.mubr.msk.bf16.mxu0 %vm187_vm2, %v5721_v6  ;;  %80 = vst [vmem:[#allocation2 + $0x78] sm:$0x11] %v79_v57  ;;  %v5402_v57 = vld [vmem:[%s6884_s3 + $0x138] sm:$0xff]  }
  0x3d   :  { %5221 = vmatpush3.bf16.msra.mxu1 %v5344_v41  ;;  %v5385_v41 = vld [vmem:[%s6884_s3 + $0x28] sm:$0xff]  }
  0x3e   :  { %5222 = vmatprep.subr.bf16.mxu1 %v5346_v31 }
  0x40   :  { %5215 = vmatmul.mubr.msk.bf16.gmra.mrb[12].mxu1 %vm187_vm2, %v5734_v12  ;;  %v75_v12 = vld [vmem:[#allocation2 + $0x70] sm:$0x11] }
  0x41   :  { %5223 = vmatpush3.bf16.msra.mxu1 %v5346_v31  ;;  %5226 = vmatprep.mubr.msk.bf16.mxu1 %vm187_vm2, %v5559_v8  ;;  %v5356_v8 = vld [vmem:[%s6882_s1 + $0xf0] sm:$0xff]   ;;  %v76_v50 = vsel %vm5811_vm10, 0, %v75_v12 }
  0x42   :  { %5224 = vmatprep.subr.bf16.mxu1 %v5348_v18  ;;  %5199 = vmatmul.mubr.msk.bf16.gmra.mrb[12].mxu0 %vm187_vm2, %v5751_v14  ;;  %77 = vst [vmem:[#allocation2 + $0x70] sm:$0x11] %v76_v50  ;;  %v5387_v31 = vld [vmem:[%s6884_s3 + $0x70] sm:$0xff]  }
  0x45   :  { %5225 = vmatpush3.bf16.msra.mxu1 %v5348_v18  ;;  %v5388_v18 = vld [vmem:[%s6884_s3 + $0x160] sm:$0xff]  }
  0x46   :  { %5234 = vmatprep.subr.bf16.mxu1 %v5350_v19 }
  0x48   :  { %5227 = vmatmul.mubr.msk.bf16.vlgmr.msra.gmra.mrb[8].mxu1 %vm187_vm2, %v5712_v0  ;;  %v102_v0 = vld [vmem:[#allocation2 + $0xd8] sm:$0x11] }
  0x49   :  { %5235 = vmatpush3.bf16.msra.mxu1 %v5350_v19  ;;  %5230 = vmatprep.mubr.msk.bf16.mxu1 %vm187_vm2, %v5721_v6  ;;  %v5368_v6 = vld [vmem:[%s6884_s3] sm:$0xff]   ;;  %v5389_v19 = vld [vmem:[%s6884_s3 + $0x30] sm:$0xff]  }
  0x4a   :  { %5236 = vmatprep.subr.bf16.mxu1 %v5353_v44 }
  0x4d   :  { %5237 = vmatpush3.bf16.msra.mxu1 %v5353_v44  ;;  %v51_v44 = vld [vmem:[#allocation2 + $0x10] sm:$0x11] }
  0x4e   :  { %5238 = vmatprep.subr.bf16.mxu1 %v5356_v8 }
  0x50   :  { %5231 = vmatmul.mubr.msk.bf16.gmra.mrb[12].mxu1 %vm187_vm2, %v5751_v14  ;;  %v5372_v14 = vld [vmem:[%s6884_s3 + $0x140] sm:$0xff]  }
  0x51   :  { %5239 = vmatpush3.bf16.msra.mxu1 %v5356_v8  ;;  %5242 = vmatprep.mubr.msk.bf16.mxu1 %vm187_vm2, %v5747_v13  ;;  %v5371_v13 = vld [vmem:[%s6884_s3 + $0x50] sm:$0xff]   ;;  %v5390_v8 = vld [vmem:[%s6884_s3 + $0x120] sm:$0xff]  }
  0x52   :  { %5240 = vmatprep.subr.bf16.mxu1 %v5359_v45  ;;  %4802 = vmatprep.subr.bf16.mxu0 %v5372_v14 }
  0x53   :  { %4803 = vmatpush3.bf16.msra.mxu0 %v5374_v16 }
  0x54   :  { %4804 = vmatprep.subr.bf16.mxu0 %v5376_v22 }
  0x55   :  { %5241 = vmatpush3.bf16.msra.mxu1 %v5359_v45  ;;  %v52_v45 = vsel %vm5811_vm10, 0, %v51_v44 }
  0x56   :  { %5250 = vmatprep.subr.bf16.mxu1 %v5362_v46  ;;  %53 = vst [vmem:[#allocation2 + $0x10] sm:$0x11] %v52_v45 }
  0x57   :  { %4805 = vmatpush3.bf16.msra.mxu0 %v5378_v26 }
  0x58   :  { %5243 = vmatmul.mubr.msk.bf16.vlgmr.msra.gmra.mrb[8].mxu1 %vm187_vm2, %v5784_v28  ;;  %v5379_v28 = vld [vmem:[%s6884_s3 + $0x60] sm:$0xff]   ;;  %4806 = vmatprep.subr.bf16.mxu0 %v5380_v29 }
  0x59   :  { %5251 = vmatpush3.bf16.msra.mxu1 %v5362_v46  ;;  %5246 = vmatprep.mubr.msk.bf16.mxu1 %vm187_vm2, %v5791_v30  ;;  %v5381_v30 = vld [vmem:[%s6884_s3 + $0x20] sm:$0xff]   ;;  %v5391_v46 = vld [vmem:[%s6884_s3 + $0x78] sm:$0xff]  }
  0x5a   :  { %5252 = vmatprep.subr.bf16.mxu1 %v5364_v47 }
  0x5b   :  { %4807 = vmatpush3.bf16.msra.mxu0 %v5382_v32 }
  0x5c   :  { %4808 = vmatprep.subr.bf16.mxu0 %v5384_v36 }
  0x5d   :  { %5253 = vmatpush3.bf16.msra.mxu1 %v5364_v47  ;;  %v5392_v47 = vld [vmem:[%s6884_s3 + $0x168] sm:$0xff]  }
  0x5e   :  { %5254 = vmatprep.subr.bf16.mxu1 %v5365_v48 }
  0x5f   :  { %4809 = vmatpush3.bf16.msra.mxu0 %v5386_v43 }
  0x60   :  { %5247 = vmatmul.mubr.msk.bf16.gmra.mrb[12].mxu1 %vm187_vm2, %v4212_v42  ;;  %4810 = vmatprep.subr.bf16.mxu0 %v5388_v18 }
  0x61   :  { %5255 = vmatpush3.bf16.msra.mxu1 %v5365_v48  ;;  %5258 = vmatprep.mubr.msk.bf16.mxu1 %vm187_vm2, %v4293_v3  ;;  %v62_v3 = vld [vmem:[#allocation2 + $0x38] sm:$0x11] }
  0x62   :  { %5256 = vmatprep.subr.bf16.mxu1 %v5366_v51  ;;  %v5393_v48 = vld [vmem:[%s6884_s3 + $0x38] sm:$0xff]  }
  0x63   :  { %4811 = vmatpush3.bf16.msra.mxu0 %v5390_v8 }
  0x64   :  { %4812 = vmatprep.subr.bf16.mxu0 %v5392_v47  ;;  %v786_v47 = vld [vmem:[#allocation2 + $0x58] sm:$0x1] }
  0x65   :  { %5257 = vmatpush3.bf16.msra.mxu1 %v5366_v51  ;;  %v5394_v51 = vld [vmem:[%s6884_s3 + $0x128] sm:$0xff]  }
  0x66   :  { %4882 = vmatprep.subr.bf16.mxu1 %v5367_v4 }
  0x67   :  { %4813 = vmatpush3.bf16.msra.mxu0 %v5394_v51 }
  0x68   :  { %5259 = vmatmul.mubr.msk.bf16.vlgmr.msra.gmra.mrb[8].mxu1 %vm187_vm2, %v5683_v40  ;;  %v63_v40 = vsel %vm5811_vm10, 0, %v62_v3  ;;  %4814 = vmatprep.subr.bf16.mxu0 %v5396_v53  ;;  %v91_v3 = vld [vmem:[#allocation2 + $0xb0] sm:$0x11]  ;;  %v783_v53 = vld [vmem:[#allocation2 + $0x48] sm:$0xf] }
  0x69   :  { %5262 = vmatprep.mubr.msk.bf16.mxu1 %vm187_vm2, %v4295_v1  ;;  %64 = vst [vmem:[#allocation2 + $0x38] sm:$0x11] %v63_v40  ;;  %v103_v1 = vsel %vm5811_vm10, 0, %v102_v0  ;;  %4883 = vmatpush3.bf16.msra.mxu1 %v5368_v6  ;;  %v92_v40 = vsel %vm5811_vm10, 0, %v91_v3 }
  0x6a   :  { %104 = vst [vmem:[#allocation2 + $0xd8] sm:$0x11] %v103_v1  ;;  %4884 = vmatprep.subr.bf16.mxu1 %v5369_v9  ;;  %93 = vst [vmem:[#allocation2 + $0xb0] sm:$0x11] %v92_v40 }
  0x6b   :  { %4815 = vmatpush3.bf16.msra.mxu0 %v5398_v54 }
  0x6c   :  { %4816 = vmatprep.subr.bf16.mxu0 %v5400_v56 }
  0x6d   :  { %4885 = vmatpush3.bf16.msra.mxu1 %v5370_v10 }
  0x6e   :  { %4886 = vmatprep.subr.bf16.mxu1 %v5371_v13 }
  0x6f   :  { %4817 = vmatpush3.bf16.msra.mxu0 %v5402_v57  ;;  %v774_v57 = vld [vmem:[#allocation2 + $0x18] sm:$0x1] }
  0x70   :  { %5263 = vmatmul.mubr.msk.bf16.gmra.mrb[12].mxu1 %vm187_vm2, %v4296_v39  ;;  %v107_v39 = vld [vmem:[#allocation2 + $0xf0] sm:$0x11]  ;;  %4842 = vmatprep.subr.bf16.mxu0 %v5404_v49  ;;  %v771_v49 = vld [vmem:[#allocation2 + $0x8] sm:$0xf] }
  0x71   :  { %4887 = vmatpush3.bf16.msra.mxu1 %v5373_v15  ;;  %v108_v42 = vsel %vm5811_vm10, 0, %v107_v39 }
  0x72   :  { %4888 = vmatprep.subr.bf16.mxu1 %v5375_v7  ;;  %109 = vst [vmem:[#allocation2 + $0xf0] sm:$0x11] %v108_v42 }
  0x75   :  { %4889 = vmatpush3.bf16.msra.mxu1 %v5377_v23 }
  0x76   :  { %4890 = vmatprep.subr.bf16.mxu1 %v5379_v28 }
  0x79   :  { %4891 = vmatpush3.bf16.msra.mxu1 %v5381_v30 }
  0x7a   :  { %4892 = vmatprep.subr.bf16.mxu1 %v5383_v58 }
  0x7d   :  { %4893 = vmatpush3.bf16.msra.mxu1 %v5385_v41 }
  0x7e   :  { %4894 = vmatprep.subr.bf16.mxu1 %v5387_v31 }
  0x81   :  { %4895 = vmatpush3.bf16.msra.mxu1 %v5389_v19 }
  0x82   :  { %4896 = vmatprep.subr.bf16.mxu1 %v5391_v46 }
  0x85   :  { %4897 = vmatpush3.bf16.msra.mxu1 %v5393_v48 }
  0x86   :  { %4962 = vmatprep.subr.bf16.mxu1 %v5395_v52 }
  0xed   :  { %v5132_v59 = vpop.f32.mrb[0].mxu0 }
  0xee   :  { %v243_v60 = vadd.f32 %v5132_v59, %v6042_v55  ;;  %v234_v61 = vpop.f32.mrb[1].mxu0 }
  0xef   :  { %v235_v62 = vadd.f32 %v6042_v55, %v234_v61  ;;  %v5133_v0 = vpop.f32.mrb[2].mxu0 }
  0xf0   :  { %v267_v1 = vmax.f32 %v243_v60, 0.0  ;;  %v246_v4 = vadd.f32 %v5133_v0, %v6042_v55  ;;  %v237_v6 = vpop.f32.mrb[3].mxu0 }
  0xf1   :  { %v265_v9 = vmax.f32 %v235_v62, 0.0  ;;  %v238_v10 = vadd.f32 %v6042_v55, %v237_v6  ;;  %v792_v62 = vld [vmem:[#allocation2 + $0x78] sm:$0x1]  ;;  %v789_v6 = vld [vmem:[#allocation2 + $0x68] sm:$0xf] }
  0xf2   :  { %v4700_v12 = vpack.c.bf16 %v267_v1, %v267_v1  ;;  %v268_v50 = vmax.f32 %v246_v4, 0.0 }
  0xf3   :  { %v4698_v13 = vpack.c.bf16 %v265_v9, %v265_v9  ;;  %v266_v14 = vmax.f32 %v238_v10, 0.0 }
  0xf4   :  { %307 = vst [vmem:[#allocation2 + $0x4c] sm:$0xf] %v4700_v12  ;;  %v4701_v15 = vpack.c.bf16 %v268_v50, %v268_v50 }
  0xf5   :  { %305 = vst [vmem:[#allocation2 + $0xc] sm:$0xf] %v4698_v13  ;;  %v4699_v16 = vpack.c.bf16 %v266_v14, %v266_v14  ;;  %v5136_v5 = vpop.f32.mrb[4].mxu0  ;;  %v780_v14 = vld [vmem:[#allocation2 + $0x38] sm:$0x1] }
  0xf6   :  { %308 = vst [vmem:[#allocation2 + $0x6c] sm:$0xf] %v4701_v15  ;;  %v259_v7 = vadd.f32 %v5136_v5, %v6042_v55  ;;  %v250_v17 = vpop.f32.mrb[5].mxu0 }
  0xf7   :  { %306 = vst [vmem:[#allocation2 + $0x2c] sm:$0xf] %v4699_v16  ;;  %v251_v20 = vadd.f32 %v6042_v55, %v250_v17  ;;  %v5137_v22 = vpop.f32.mrb[6].mxu0  ;;  %v777_v16 = vld [vmem:[#allocation2 + $0x28] sm:$0xf] }
  0xf8   :  { %v271_v24 = vmax.f32 %v259_v7, 0.0  ;;  %v262_v25 = vadd.f32 %v5137_v22, %v6042_v55  ;;  %v253_v26 = vpop.f32.mrb[7].mxu0 }
  0xf9   :  { %v269_v29 = vmax.f32 %v251_v20, 0.0  ;;  %v254_v30 = vadd.f32 %v6042_v55, %v253_v26 }
  0xfa   :  { %v4704_v21 = vpack.c.bf16 %v271_v24, %v271_v24  ;;  %v272_v34 = vmax.f32 %v262_v25, 0.0 }
  0xfb   :  { %v5164_v23 = vpop.f32.mrb[0].mxu1  ;;  %v4702_v36 = vpack.c.bf16 %v269_v29, %v269_v29  ;;  %v270_v38 = vmax.f32 %v254_v30, 0.0 }
  0xfc   :  { %v650_v27 = vadd.f32 %v5164_v23, %v6042_v55  ;;  %v617_v28 = vpop.f32.mrb[1].mxu1  ;;  %311 = vst [vmem:[#allocation2 + $0xec] sm:$0xf] %v4704_v21  ;;  %v4705_v42 = vpack.c.bf16 %v272_v34, %v272_v34 }
  0xfd   :  { %v648_v32 = vadd.f32 %v6042_v55, %v617_v28  ;;  %v5165_v11 = vpop.f32.mrb[2].mxu1  ;;  %309 = vst [vmem:[#allocation2 + $0xac] sm:$0xf] %v4702_v36  ;;  %v4703_v18 = vpack.c.bf16 %v270_v38, %v270_v38 }
  0xfe   :  { %v658_v58 = vmax.f32 %v650_v27, 0.0  ;;  %v651_v2 = vadd.f32 %v5165_v11, %v6042_v55  ;;  %v620_v63 = vpop.f32.mrb[3].mxu1  ;;  %312 = vst [vmem:[#allocation2 + $0x10c] sm:$0xf] %v4705_v42  ;;  %v810_v42 = vld [vmem:[#allocation2 + $0xf8] sm:$0x1] }
  0xff   :  { %v656_v39 = vmax.f32 %v648_v32, 0.0  ;;  %v649_v41 = vadd.f32 %v6042_v55, %v620_v63  ;;  %310 = vst [vmem:[#allocation2 + $0xcc] sm:$0xf] %v4703_v18 }
 0x100   :  { %v4708_v43 = vpack.c.bf16 %v658_v58, %v658_v58  ;;  %v659_v31 = vmax.f32 %v651_v2, 0.0 }
 0x101   :  { %v4706_v19 = vpack.c.bf16 %v656_v39, %v656_v39  ;;  %v657_v44 = vmax.f32 %v649_v41, 0.0 }
 0x102   :  { %v705_v8 = vshrl.u32 %v4708_v43, 16  ;;  %v4709_v45 = vpack.c.bf16 %v659_v31, %v659_v31  ;;  %v708_v46 = vshll.u32 %v4708_v43, 16  ;;  %v798_v31 = vld [vmem:[#allocation2 + $0xb8] sm:$0x1] }
 0x103   :  { %v689_v48 = vshrl.u32 %v4706_v19, 16  ;;  %v692_v51 = vshll.u32 %v4706_v19, 16  ;;  %v4707_v52 = vpack.c.bf16 %v657_v44, %v657_v44  ;;  %v5168_v54 = vpop.f32.mrb[4].mxu1  ;;  %v807_v44 = vld [vmem:[#allocation2 + $0xe8] sm:$0xf] }
 0x104   :  { %v707_v56 = vrot.slane %v705_v8, 7  ;;  %v713_v3 = vshrl.u32 %v4709_v45, 16  ;;  %v716_v40 = vshll.u32 %v4709_v45, 16  ;;  %v654_v59 = vadd.f32 %v5168_v54, %v6042_v55  ;;  %v633_v60 = vpop.f32.mrb[5].mxu1  ;;  %v795_v8 = vld [vmem:[#allocation2 + $0xa8] sm:$0xf] }
 0x105   :  { %v691_v61 = vrot.slane %v689_v48, 7  ;;  %v697_v0 = vshrl.u32 %v4707_v52, 16  ;;  %v700_v1 = vshll.u32 %v4707_v52, 16  ;;  %v652_v9 = vadd.f32 %v6042_v55, %v633_v60  ;;  %v5169_v10 = vpop.f32.mrb[6].mxu1 }
 0x106   :  { %v710_v12 = vor.u32 %v708_v46, %v707_v56  ;;  %v711_v50 = vrot.slane %v707_v56, 4  ;;  %v715_v13 = vrot.slane %v713_v3, 7  ;;  %v662_v15 = vmax.f32 %v654_v59, 0.0  ;;  %v636_v5 = vpop.f32.mrb[7].mxu1 }
 0x107   :  { %v694_v7 = vor.u32 %v692_v51, %v691_v61  ;;  %v695_v17 = vrot.slane %v691_v61, 4  ;;  %v699_v20 = vrot.slane %v697_v0, 7  ;;  %v660_v22 = vmax.f32 %v652_v9, 0.0  ;;  %v813_v9 = vld [vmem:[#allocation2 + $0x108] sm:$0xf] }
 0x108   :  { %v787_v23 = vsel %vm5798_vm7, %v711_v50, %v786_v47  ;;  %v718_v24 = vor.u32 %v716_v40, %v715_v13  ;;  %v719_v25 = vrot.slane %v715_v13, 4  ;;  %v784_v26 = vsel %vm6059_vm13, %v710_v12, %v783_v53 }
 0x109   :  { %788 = vst [vmem:[#allocation2 + $0x58] sm:$0x1] %v787_v23  ;;  %v775_v27 = vsel %vm5798_vm7, %v695_v17, %v774_v57  ;;  %v702_v28 = vor.u32 %v700_v1, %v699_v20  ;;  %v703_v29 = vrot.slane %v699_v20, 4  ;;  %785 = vst [vmem:[#allocation2 + $0x48] sm:$0xf] %v784_v26  ;;  %v772_v30 = vsel %vm6059_vm13, %v694_v7, %v771_v49 }
 0x10a   :  { %776 = vst [vmem:[#allocation2 + $0x18] sm:$0x1] %v775_v27  ;;  %v793_v32 = vsel %vm5798_vm7, %v719_v25, %v792_v62  ;;  %773 = vst [vmem:[#allocation2 + $0x8] sm:$0xf] %v772_v30  ;;  %v4712_v11 = vpack.c.bf16 %v662_v15, %v662_v15  ;;  %v790_v21 = vsel %vm6059_vm13, %v718_v24, %v789_v6  ;;  %v816_v62 = vld [vmem:[#allocation2 + $0x118] sm:$0x1] }
 0x10b   :  { %v4710_v34 = vpack.c.bf16 %v660_v22, %v660_v22  ;;  %794 = vst [vmem:[#allocation2 + $0x78] sm:$0x1] %v793_v32  ;;  %v781_v58 = vsel %vm5798_vm7, %v703_v29, %v780_v14  ;;  %791 = vst [vmem:[#allocation2 + $0x68] sm:$0xf] %v790_v21  ;;  %v778_v2 = vsel %vm6059_vm13, %v702_v28, %v777_v16  ;;  %v804_v6 = vld [vmem:[#allocation2 + $0xd8] sm:$0x1] }
 0x10c   :  { %v655_v63 = vadd.f32 %v5169_v10, %v6042_v55  ;;  %v653_v36 = vadd.f32 %v6042_v55, %v636_v5  ;;  %782 = vst [vmem:[#allocation2 + $0x38] sm:$0x1] %v781_v58  ;;  %v737_v38 = vshrl.u32 %v4712_v11, 16  ;;  %779 = vst [vmem:[#allocation2 + $0x28] sm:$0xf] %v778_v2  ;;  %v740_v41 = vshll.u32 %v4712_v11, 16 }
 0x10d   :  { %v721_v39 = vshrl.u32 %v4710_v34, 16  ;;  %v724_v43 = vshll.u32 %v4710_v34, 16  ;;  %v801_v10 = vld [vmem:[#allocation2 + $0xc8] sm:$0xf]  ;;  %v5196_v15 = vpop.f32.mrb[8].mxu0 }
 0x10e   :  { %v663_v18 = vmax.f32 %v655_v63, 0.0  ;;  %v661_v19 = vmax.f32 %v653_v36, 0.0  ;;  %v739_v45 = vrot.slane %v737_v38, 7  ;;  %v1037_v16 = vadd.f32 %v5196_v15, %v6042_v55  ;;  %v1004_v5 = vpop.f32.mrb[9].mxu0 }
 0x10f   :  { %v723_v46 = vrot.slane %v721_v39, 7  ;;  %v5197_v23 = vpop.f32.mrb[10].mxu0  ;;  %v1035_v25 = vadd.f32 %v6042_v55, %v1004_v5 }
 0x110   :  { %v4713_v47 = vpack.c.bf16 %v663_v18, %v663_v18  ;;  %v4711_v48 = vpack.c.bf16 %v661_v19, %v661_v19  ;;  %v742_v51 = vor.u32 %v740_v41, %v739_v45  ;;  %v743_v52 = vrot.slane %v739_v45, 4  ;;  %v1007_v27 = vpop.f32.mrb[11].mxu0 }
 0x111   :  { %v726_v53 = vor.u32 %v724_v43, %v723_v46  ;;  %v727_v54 = vrot.slane %v723_v46, 4  ;;  %v1045_v24 = vmax.f32 %v1037_v16, 0.0  ;;  %v1038_v26 = vadd.f32 %v5197_v23, %v6042_v55 }
 0x112   :  { %v745_v56 = vshrl.u32 %v4713_v47, 16  ;;  %v729_v57 = vshrl.u32 %v4711_v48, 16  ;;  %v811_v3 = vsel %vm5798_vm7, %v743_v52, %v810_v42  ;;  %v808_v49 = vsel %vm6059_vm13, %v742_v51, %v807_v44 }
 0x113   :  { %v799_v40 = vsel %vm5798_vm7, %v727_v54, %v798_v31  ;;  %v796_v59 = vsel %vm6059_vm13, %v726_v53, %v795_v8  ;;  %812 = vst [vmem:[#allocation2 + $0xf8] sm:$0x1] %v811_v3  ;;  %v748_v61 = vshll.u32 %v4713_v47, 16  ;;  %v732_v1 = vshll.u32 %v4711_v48, 16  ;;  %809 = vst [vmem:[#allocation2 + $0xe8] sm:$0xf] %v808_v49 }
 0x114   :  { %800 = vst [vmem:[#allocation2 + $0xb8] sm:$0x1] %v799_v40  ;;  %v747_v60 = vrot.slane %v745_v56, 7  ;;  %v731_v0 = vrot.slane %v729_v57, 7  ;;  %797 = vst [vmem:[#allocation2 + $0xa8] sm:$0xf] %v796_v59  ;;  %v1036_v28 = vadd.f32 %v6042_v55, %v1007_v27  ;;  %v4716_v29 = vpack.c.bf16 %v1045_v24, %v1045_v24 }
 0x115   :  { %v1043_v30 = vmax.f32 %v1035_v25, 0.0  ;;  %v1046_v32 = vmax.f32 %v1038_v26, 0.0  ;;  %v5200_v2 = vpop.f32.mrb[12].mxu0  ;;  %v6114_v54 = vld [vmem:[#allocation2] sm:$0xff]  ;;  %v126_v3 = vld [vmem:[#allocation2 + $0x138] sm:$0x11] }
 0x116   :  { %v750_v12 = vor.u32 %v748_v61, %v747_v60  ;;  %v751_v50 = vrot.slane %v747_v60, 4  ;;  %v734_v13 = vor.u32 %v732_v1, %v731_v0  ;;  %v735_v14 = vrot.slane %v731_v0, 4  ;;  %1086 = vst [vmem:[#allocation2 + $0x64] sm:$0xf] %v4716_v29  ;;  %v1020_v36 = vpop.f32.mrb[13].mxu0 }
 0x117   :  { %v1044_v11 = vmax.f32 %v1036_v28, 0.0  ;;  %v4714_v21 = vpack.c.bf16 %v1043_v30, %v1043_v30  ;;  %v4717_v34 = vpack.c.bf16 %v1046_v32, %v1046_v32  ;;  %v1041_v63 = vadd.f32 %v5200_v2, %v6042_v55  ;;  %v5201_v39 = vpop.f32.mrb[14].mxu0  ;;  %v6124_v1 = vld [vmem:[#allocation2 + $0x10] sm:$0x11]  ;;  %v1678_v24 = vld [vmem:[#allocation2 + $0x60] sm:$0xf] }
 0x118   :  { %v817_v7 = vsel %vm5798_vm7, %v751_v50, %v816_v62  ;;  %v805_v17 = vsel %vm5798_vm7, %v735_v14, %v804_v6  ;;  %v814_v20 = vsel %vm6059_vm13, %v750_v12, %v813_v9  ;;  %v802_v22 = vsel %vm6059_vm13, %v734_v13, %v801_v10  ;;  %v1023_v43 = vpop.f32.mrb[15].mxu0  ;;  %v1681_v25 = vld [vmem:[#allocation2 + $0x70] sm:$0x1]  ;;  %v1666_v32 = vld [vmem:[#allocation2 + $0x20] sm:$0xf] }
 0x119   :  { %818 = vst [vmem:[#allocation2 + $0x118] sm:$0x1] %v817_v7  ;;  %806 = vst [vmem:[#allocation2 + $0xd8] sm:$0x1] %v805_v17  ;;  %v4715_v58 = vpack.c.bf16 %v1044_v11, %v1044_v11  ;;  %v1039_v38 = vadd.f32 %v6042_v55, %v1020_v36  ;;  %v1049_v41 = vmax.f32 %v1041_v63, 0.0  ;;  %v1042_v42 = vadd.f32 %v5201_v39, %v6042_v55 }
 0x11a   :  { %815 = vst [vmem:[#allocation2 + $0x108] sm:$0xf] %v814_v20  ;;  %803 = vst [vmem:[#allocation2 + $0xc8] sm:$0xf] %v802_v22  ;;  %v1040_v18 = vadd.f32 %v6042_v55, %v1023_v43  ;;  %v6108_v51 = vld [vmem:[#allocation2 + $0xe8] sm:$0xff]  ;;  %v1811_v56 = vshrl.u32 %v6114_v54, 16 }
 0x11b   :  { %1084 = vst [vmem:[#allocation2 + $0x24] sm:$0xf] %v4714_v21  ;;  %1087 = vst [vmem:[#allocation2 + $0x84] sm:$0xf] %v4717_v34  ;;  %v1047_v31 = vmax.f32 %v1039_v38, 0.0  ;;  %v4720_v19 = vpack.c.bf16 %v1049_v41, %v1049_v41  ;;  %v1050_v44 = vmax.f32 %v1042_v42, 0.0 }
 0x11c   :  { %1085 = vst [vmem:[#allocation2 + $0x44] sm:$0xf] %v4715_v58  ;;  %v1048_v45 = vmax.f32 %v1040_v18, 0.0  ;;  %v1814_v57 = vshll.u32 %v6114_v54, 16  ;;  %v127_v40 = vsel %vm5811_vm10, 0, %v126_v3  ;;  %v6121_v61 = vrot.slane %v1811_v56, 4 }
 0x11d   :  { %v4718_v8 = vpack.c.bf16 %v1047_v31, %v1047_v31  ;;  %1090 = vst [vmem:[#allocation2 + $0x104] sm:$0xf] %v4720_v19  ;;  %v4721_v46 = vpack.c.bf16 %v1050_v44, %v1050_v44  ;;  %128 = vst [vmem:[#allocation2 + $0x138] sm:$0x11] %v127_v40  ;;  %v1820_v22 = vshll.u32 %v6124_v1, 16 }
 0x11e   :  { %v4719_v47 = vpack.c.bf16 %v1048_v45, %v1048_v45  ;;  %v6126_v6 = vrot.slane %v1814_v57, 5  ;;  %v1684_v63 = vld [vmem:[#allocation2 + $0x80] sm:$0xf]  ;;  %v1669_v31 = vld [vmem:[#allocation2 + $0x30] sm:$0x1] }
 0x11f   :  { %1088 = vst [vmem:[#allocation2 + $0xc4] sm:$0xf] %v4718_v8  ;;  %1091 = vst [vmem:[#allocation2 + $0x124] sm:$0xf] %v4721_v46  ;;  %v1687_v46 = vld [vmem:[#allocation2 + $0x90] sm:$0x1] }
 0x120   :  { %1089 = vst [vmem:[#allocation2 + $0xe4] sm:$0xf] %v4719_v47  ;;  %v1817_v20 = vor.u32 %v6126_v6, %v6121_v61 }
 0x121   :  { %v6106_v48 = vld [vmem:[#allocation2 + $0xc8] sm:$0xff] }
 0x122   :  { %v4548_v52 = vcombine.high %v6106_v48, %v6108_v51  ;;  %v4547_v53 = vcombine.low %v6106_v48, %v6108_v51 }
 0x13b   :  { %v5260_v49 = vpop.f32.mrb[8].mxu1 }
 0x13c   :  { %v1548_v59 = vadd.f32 %v5260_v49, %v6042_v55  ;;  %v1507_v60 = vpop.f32.mrb[9].mxu1 }
 0x13d   :  { %v1546_v62 = vadd.f32 %v6042_v55, %v1507_v60  ;;  %v5261_v0 = vpop.f32.mrb[10].mxu1  ;;  %v1675_v60 = vld [vmem:[#allocation2 + $0x50] sm:$0x1] }
 0x13e   :  { %v1556_v9 = vmax.f32 %v1548_v59, 0.0  ;;  %v1549_v10 = vadd.f32 %v5261_v0, %v6042_v55  ;;  %v1510_v12 = vpop.f32.mrb[11].mxu1  ;;  %v1672_v59 = vld [vmem:[#allocation2 + $0x40] sm:$0xf] }
 0x13f   :  { %v1554_v50 = vmax.f32 %v1546_v62, 0.0  ;;  %v1547_v13 = vadd.f32 %v6042_v55, %v1510_v12 }
 0x140   :  { %v4724_v14 = vpack.c.bf16 %v1556_v9, %v1556_v9  ;;  %v1557_v15 = vmax.f32 %v1549_v10, 0.0 }
 0x141   :  { %v4722_v16 = vpack.c.bf16 %v1554_v50, %v1554_v50  ;;  %v1555_v5 = vmax.f32 %v1547_v13, 0.0 }
 0x142   :  { %v1603_v7 = vshrl.u32 %v4724_v14, 16  ;;  %v4725_v17 = vpack.c.bf16 %v1557_v15, %v1557_v15  ;;  %v1606_v23 = vshll.u32 %v4724_v14, 16 }
 0x143   :  { %v1587_v26 = vshrl.u32 %v4722_v16, 16  ;;  %v1590_v27 = vshll.u32 %v4722_v16, 16  ;;  %v4723_v28 = vpack.c.bf16 %v1555_v5, %v1555_v5  ;;  %v5264_v29 = vpop.f32.mrb[12].mxu1 }
 0x144   :  { %v1605_v30 = vrot.slane %v1603_v7, 7  ;;  %v1611_v11 = vshrl.u32 %v4725_v17, 16  ;;  %v1614_v21 = vshll.u32 %v4725_v17, 16  ;;  %v1552_v34 = vadd.f32 %v5264_v29, %v6042_v55  ;;  %v1523_v58 = vpop.f32.mrb[13].mxu1 }
 0x145   :  { %v1589_v2 = vrot.slane %v1587_v26, 7  ;;  %v1595_v36 = vshrl.u32 %v4723_v28, 16  ;;  %v1598_v38 = vshll.u32 %v4723_v28, 16  ;;  %v1550_v39 = vadd.f32 %v6042_v55, %v1523_v58  ;;  %v5265_v41 = vpop.f32.mrb[14].mxu1 }
 0x146   :  { %v1608_v42 = vor.u32 %v1606_v23, %v1605_v30  ;;  %v1609_v43 = vrot.slane %v1605_v30, 4  ;;  %v1613_v18 = vrot.slane %v1611_v11, 7  ;;  %v1560_v19 = vmax.f32 %v1552_v34, 0.0  ;;  %v1526_v44 = vpop.f32.mrb[15].mxu1  ;;  %v1705_v34 = vld [vmem:[#allocation2 + $0x110] sm:$0x1] }
 0x147   :  { %v1592_v8 = vor.u32 %v1590_v27, %v1589_v2  ;;  %v1593_v45 = vrot.slane %v1589_v2, 4  ;;  %v1597_v47 = vrot.slane %v1595_v36, 7  ;;  %v1558_v56 = vmax.f32 %v1550_v39, 0.0 }
 0x148   :  { %v1679_v57 = vsel %vm6059_vm13, %v1608_v42, %v1678_v24  ;;  %v1682_v3 = vsel %vm5798_vm7, %v1609_v43, %v1681_v25  ;;  %v1616_v40 = vor.u32 %v1614_v21, %v1613_v18  ;;  %v1617_v49 = vrot.slane %v1613_v18, 4  ;;  %v86_v24 = vld [vmem:[#allocation2 + $0x98] sm:$0x11]  ;;  %v1702_v25 = vld [vmem:[#allocation2 + $0x100] sm:$0xf] }
 0x149   :  { %1680 = vst [vmem:[#allocation2 + $0x60] sm:$0xf] %v1679_v57  ;;  %1683 = vst [vmem:[#allocation2 + $0x70] sm:$0x1] %v1682_v3  ;;  %v1667_v62 = vsel %vm6059_vm13, %v1592_v8, %v1666_v32  ;;  %v1670_v0 = vsel %vm5798_vm7, %v1593_v45, %v1669_v31  ;;  %v1600_v9 = vor.u32 %v1598_v38, %v1597_v47  ;;  %v1601_v10 = vrot.slane %v1597_v47, 4 }
 0x14a   :  { %1668 = vst [vmem:[#allocation2 + $0x20] sm:$0xf] %v1667_v62  ;;  %1671 = vst [vmem:[#allocation2 + $0x30] sm:$0x1] %v1670_v0  ;;  %v1685_v12 = vsel %vm6059_vm13, %v1616_v40, %v1684_v63  ;;  %v1688_v50 = vsel %vm5798_vm7, %v1617_v49, %v1687_v46  ;;  %v4728_v13 = vpack.c.bf16 %v1560_v19, %v1560_v19  ;;  %v6156_v28 = vrot.slane %v1817_v20, 4  ;;  %v5397_v0 = vld [vmem:[%s6884_s3 + $0x200] sm:$0xff]  }
 0x14b   :  { %v4726_v14 = vpack.c.bf16 %v1558_v56, %v1558_v56  ;;  %1686 = vst [vmem:[#allocation2 + $0x80] sm:$0xf] %v1685_v12  ;;  %1689 = vst [vmem:[#allocation2 + $0x90] sm:$0x1] %v1688_v50  ;;  %v1673_v15 = vsel %vm6059_vm13, %v1600_v9, %v1672_v59  ;;  %v1676_v16 = vsel %vm5798_vm7, %v1601_v10, %v1675_v60  ;;  %v1690_v21 = vld [vmem:[#allocation2 + $0xc0] sm:$0xf] }
 0x14c   :  { %v1553_v5 = vadd.f32 %v5265_v41, %v6042_v55  ;;  %v1551_v7 = vadd.f32 %v6042_v55, %v1526_v44  ;;  %1674 = vst [vmem:[#allocation2 + $0x40] sm:$0xf] %v1673_v15  ;;  %1677 = vst [vmem:[#allocation2 + $0x50] sm:$0x1] %v1676_v16  ;;  %v1635_v17 = vshrl.u32 %v4728_v13, 16  ;;  %v1638_v30 = vshll.u32 %v4728_v13, 16 }
 0x14d   :  { %v1619_v23 = vshrl.u32 %v4726_v14, 16  ;;  %v1622_v11 = vshll.u32 %v4726_v14, 16  ;;  %v1693_v55 = vld [vmem:[#allocation2 + $0xd0] sm:$0x1]  ;;  %v6160_v63 = vrot.slane %v1820_v22, 5  ;;  %v87_v36 = vsel %vm5811_vm10, 0, %v86_v24 }
 0x14e   :  { %v1561_v26 = vmax.f32 %v1553_v5, 0.0  ;;  %v1559_v27 = vmax.f32 %v1551_v7, 0.0  ;;  %v1637_v29 = vrot.slane %v1635_v17, 7  ;;  %88 = vst [vmem:[#allocation2 + $0x98] sm:$0x11] %v87_v36  ;;  %v5399_v13 = vld [vmem:[%s6884_s3 + $0x248] sm:$0xff]  }
 0x14f   :  { %v1621_v32 = vrot.slane %v1619_v23, 7  ;;  %v1708_v19 = vld [vmem:[#allocation2 + $0x120] sm:$0xf]  ;;  %v1711_v44 = vld [vmem:[#allocation2 + $0x130] sm:$0x1] }
 0x150   :  { %v4729_v58 = vpack.c.bf16 %v1561_v26, %v1561_v26  ;;  %v4727_v2 = vpack.c.bf16 %v1559_v27, %v1559_v27  ;;  %v1640_v38 = vor.u32 %v1638_v30, %v1637_v29  ;;  %v1641_v61 = vrot.slane %v1637_v29, 4  ;;  %v1696_v8 = vld [vmem:[#allocation2 + $0xe0] sm:$0xf]  ;;  %v1699_v40 = vld [vmem:[#allocation2 + $0xf0] sm:$0x1]  ;;  %v5401_v30 = vld [vmem:[%s6884_s3 + $0x208] sm:$0xff]  }
 0x151   :  { %v1624_v6 = vor.u32 %v1622_v11, %v1621_v32  ;;  %v1625_v20 = vrot.slane %v1621_v32, 4  ;;  %v6164_v31 = vld [vmem:[#allocation2 + $0x20] sm:$0xff]  ;;  %v1796_v14 = vld [vmem:[#allocation2 + $0x30] sm:$0x11] }
 0x152   :  { %v1643_v39 = vshrl.u32 %v4729_v58, 16  ;;  %v1646_v41 = vshll.u32 %v4729_v58, 16  ;;  %v1627_v42 = vshrl.u32 %v4727_v2, 16  ;;  %v1630_v43 = vshll.u32 %v4727_v2, 16  ;;  %v6178_v3 = vld [vmem:[#allocation2 + $0x60] sm:$0xff] }
 0x153   :  { %v1703_v18 = vsel %vm6059_vm13, %v1640_v38, %v1702_v25  ;;  %v1706_v1 = vsel %vm5798_vm7, %v1641_v61, %v1705_v34  ;;  %v1691_v35 = vsel %vm6059_vm13, %v1624_v6, %v1690_v21  ;;  %v1694_v22 = vsel %vm5798_vm7, %v1625_v20, %v1693_v55  ;;  %v6176_v57 = vld [vmem:[#allocation2 + $0x40] sm:$0xff]  ;;  %v1798_v17 = vld [vmem:[#allocation2 + $0x50] sm:$0x11] }
 0x154   :  { %1704 = vst [vmem:[#allocation2 + $0x100] sm:$0xf] %v1703_v18  ;;  %1707 = vst [vmem:[#allocation2 + $0x110] sm:$0x1] %v1706_v1  ;;  %v1645_v45 = vrot.slane %v1643_v39, 7  ;;  %v1629_v46 = vrot.slane %v1627_v42, 7  ;;  %v4426_v49 = vcombine.high %v6114_v54, %v6164_v31  ;;  %v4425_v59 = vcombine.low %v6114_v54, %v6164_v31 }
 0x155   :  { %1692 = vst [vmem:[#allocation2 + $0xc0] sm:$0xf] %v1691_v35  ;;  %1695 = vst [vmem:[#allocation2 + $0xd0] sm:$0x1] %v1694_v22  ;;  %v1839_v47 = vshrl.u32 %v6164_v31, 16  ;;  %v1842_v56 = vshll.u32 %v6164_v31, 16  ;;  %v4430_v5 = vcombine.high %v6176_v57, %v6178_v3  ;;  %v1823_v2 = vsel %vm5601_vm3, %v6156_v28, %v6160_v63 }
 0x156   :  { %v1867_v60 = vshrl.u32 %v6176_v57, 16  ;;  %v1870_v62 = vshll.u32 %v6176_v57, 16  ;;  %v1648_v9 = vor.u32 %v1646_v41, %v1645_v45  ;;  %v1649_v10 = vrot.slane %v1645_v45, 4  ;;  %2789 = vmatprep.mubr.bf16.mxu1 %v4426_v49  ;;  %v1800_v27 = vld [vmem:[#allocation2 + $0x70] sm:$0x11] }
 0x157   :  { %v1632_v12 = vor.u32 %v1630_v43, %v1629_v46  ;;  %v1633_v50 = vrot.slane %v1629_v46, 4  ;;  %v1895_v15 = vshrl.u32 %v6178_v3, 16  ;;  %v1898_v16 = vshll.u32 %v6178_v3, 16  ;;  %2790 = vmatmul.mubr.bf16.vlgmr.msra.gmra.mrb[16].mxu1 %v4425_v59  ;;  %v6204_v29 = vld [vmem:[#allocation2 + $0xb0] sm:$0x11] }
 0x158   :  { %v1841_v7 = vrot.slane %v1839_v47, 4  ;;  %v1709_v23 = vsel %vm6059_vm13, %v1648_v9, %v1708_v19  ;;  %v1712_v24 = vsel %vm5798_vm7, %v1649_v10, %v1711_v44  ;;  %2797 = vmatprep.mubr.bf16.mxu1 %v4430_v5  ;;  %4963 = vmatpush3.bf16.msra.mxu1 %v5397_v0  ;;  %v1844_v32 = vrot.slane %v1842_v56, 5  ;;  %v5405_v35 = vld [vmem:[%s6884_s3 + $0x210] sm:$0xff]   ;;  %v5407_v19 = vld [vmem:[%s6884_s3 + $0x258] sm:$0xff]   ;;  %v5406_v9 = vld [vmem:[%s6884_s3 + $0x180] sm:$0xff]  }
 0x159   :  { %v1697_v25 = vsel %vm6059_vm13, %v1632_v12, %v1696_v8  ;;  %v1700_v26 = vsel %vm5798_vm7, %v1633_v50, %v1699_v40  ;;  %1710 = vst [vmem:[#allocation2 + $0x120] sm:$0xf] %v1709_v23  ;;  %1713 = vst [vmem:[#allocation2 + $0x130] sm:$0x1] %v1712_v24  ;;  %v1848_v4 = vshll.u32 %v1796_v14, 16  ;;  %v1869_v11 = vrot.slane %v1867_v60, 4  ;;  %4964 = vmatprep.subr.bf16.mxu1 %v5399_v13 }
 0x15a   :  { %1698 = vst [vmem:[#allocation2 + $0xe0] sm:$0xf] %v1697_v25  ;;  %1701 = vst [vmem:[#allocation2 + $0xf0] sm:$0x1] %v1700_v26  ;;  %v1872_v21 = vrot.slane %v1870_v62, 5  ;;  %v1876_v34 = vshll.u32 %v1798_v17, 16  ;;  %v1845_v36 = vor.u32 %v1844_v32, %v1841_v7  ;;  %v4429_v39 = vcombine.low %v6176_v57, %v6178_v3 }
 0x15b   :  { %v1897_v55 = vrot.slane %v1895_v15, 4  ;;  %v1900_v58 = vrot.slane %v1898_v16, 5  ;;  %v1904_v61 = vshll.u32 %v1800_v27, 16  ;;  %v6218_v6 = vld [vmem:[#allocation2 + $0x100] sm:$0xff]  ;;  %v1932_v20 = vshll.u32 %v6204_v29, 16  ;;  %v5408_v13 = vld [vmem:[%s6884_s3 + $0x1c8] sm:$0xff]  }
 0x15c   :  { %v6216_v38 = vld [vmem:[#allocation2 + $0xc0] sm:$0xff]  ;;  %v1873_v43 = vor.u32 %v1872_v21, %v1869_v11  ;;  %4965 = vmatpush3.bf16.msra.mxu1 %v5401_v30  ;;  %v6225_v18 = vrot.slane %v1845_v36, 4  ;;  %v1850_v63 = vrot.slane %v1848_v4, 5  ;;  %v1878_v8 = vrot.slane %v1876_v34, 5  ;;  %v1804_v47 = vld [vmem:[#allocation2 + $0xd0] sm:$0x11] }
 0x15d   :  { %v1951_v41 = vshrl.u32 %v6216_v38, 16  ;;  %v1954_v42 = vshll.u32 %v6216_v38, 16  ;;  %v4434_v1 = vcombine.high %v6114_v54, %v6216_v38  ;;  %v1901_v22 = vor.u32 %v1900_v58, %v1897_v55  ;;  %4966 = vmatprep.subr.bf16.mxu1 %v5403_v33  ;;  %v5409_v14 = vld [vmem:[%s6884_s3 + $0x218] sm:$0xff]   ;;  %v5411_v17 = vld [vmem:[%s6884_s3 + $0x260] sm:$0xff]   ;;  %v6263_v27 = vld [vmem:[#allocation2 + $0x28] sm:$0xff] }
 0x15e   :  { %v6235_v44 = vrot.slane %v1873_v43, 4  ;;  %v1906_v45 = vrot.slane %v1904_v61, 5  ;;  %v2007_v46 = vshrl.u32 %v6218_v6, 16  ;;  %v1851_v56 = vsel %vm5601_vm3, %v6225_v18, %v1850_v63  ;;  %v5410_v29 = vld [vmem:[%s6884_s3 + $0x188] sm:$0xff]   ;;  %v5412_v32 = vld [vmem:[%s6884_s3 + $0x1d0] sm:$0xff]   ;;  %v5413_v55 = vld [vmem:[%s6884_s3 + $0x220] sm:$0xff]  }
 0x15f   :  { %v1902_v40 = vrot.slane %v1901_v22, 4  ;;  %v1953_v49 = vrot.slane %v1951_v41, 4  ;;  %v1956_v59 = vrot.slane %v1954_v42, 5  ;;  %v4377_v60 = vcombine.low %v1823_v2, %v1851_v56  ;;  %2798 = vmatmul.mubr.bf16.gmra.mrb[20].mxu1 %v4429_v39  ;;  %v6271_v21 = vld [vmem:[#allocation2 + $0x8] sm:$0xff]  ;;  %v5414_v42 = vld [vmem:[%s6884_s3 + $0x190] sm:$0xff]  }
 0x160   :  { %v4378_v62 = vcombine.high %v1823_v2, %v1851_v56  ;;  %v1879_v0 = vsel %vm5601_vm3, %v6235_v44, %v1878_v8  ;;  %v2010_v12 = vshll.u32 %v6218_v6, 16  ;;  %2805 = vmatprep.mubr.bf16.mxu1 %v4434_v1  ;;  %4967 = vmatpush3.bf16.msra.mxu1 %v5405_v35  ;;  %v1960_v5 = vshll.u32 %v1804_v47, 16  ;;  %v5415_v39 = vld [vmem:[%s6884_s3 + $0x268] sm:$0xff]   ;;  %v1808_v43 = vld [vmem:[#allocation2 + $0x110] sm:$0x11]  ;;  %v5416_v35 = vld [vmem:[%s6884_s3 + $0x1d8] sm:$0xff]  }
 0x161   :  { %v6247_v10 = vld [vmem:[#allocation2 + $0xe0] sm:$0xff]  ;;  %v1907_v50 = vsel %vm5601_vm3, %v1902_v40, %v1906_v45  ;;  %4968 = vmatprep.subr.bf16.mxu1 %v5407_v19  ;;  %v1957_v23 = vor.u32 %v1956_v59, %v1953_v49  ;;  %v1934_v24 = vrot.slane %v1932_v20, 5  ;;  %v2009_v11 = vrot.slane %v2007_v46, 4  ;;  %v1806_v58 = vld [vmem:[#allocation2 + $0xf0] sm:$0x11]  ;;  %v5417_v45 = vld [vmem:[%s6884_s3 + $0x228] sm:$0xff]  }
 0x162   :  { %v1979_v15 = vshrl.u32 %v6247_v10, 16  ;;  %v1982_v16 = vshll.u32 %v6247_v10, 16  ;;  %2387 = vmatprep.mubr.bf16.mxu0 %v4378_v62  ;;  %v4382_v7 = vcombine.high %v1879_v0, %v1907_v50  ;;  %v1962_v4 = vrot.slane %v1960_v5, 5  ;;  %v5419_v56 = vld [vmem:[%s6884_s3 + $0x270] sm:$0xff]   ;;  %v6312_v59 = vld [vmem:[#allocation2 + $0x68] sm:$0xff] }
 0x163   :  { %2388 = vmatmul.mubr.bf16.vlgmr.msra.gmra.mrb[16].mxu0 %v4377_v60  ;;  %v1958_v30 = vrot.slane %v1957_v23, 4  ;;  %v2012_v33 = vrot.slane %v2010_v12, 5  ;;  %v4433_v34 = vcombine.low %v6114_v54, %v6216_v38  ;;  %v1853_v2 = vshrl.u32 %v6263_v27, 16  ;;  %v5418_v60 = vld [vmem:[%s6884_s3 + $0x198] sm:$0xff]   ;;  %v6325_v5 = vld [vmem:[#allocation2 + $0x48] sm:$0xff] }
 0x164   :  { %v1981_v25 = vrot.slane %v1979_v15, 4  ;;  %v1984_v26 = vrot.slane %v1982_v16, 5  ;;  %2395 = vmatprep.mubr.bf16.mxu0 %v4382_v7  ;;  %4843 = vmatpush3.bf16.msra.mxu0 %v5406_v9  ;;  %v1856_v36 = vshll.u32 %v6263_v27, 16  ;;  %v4438_v61 = vcombine.high %v6247_v10, %v6218_v6  ;;  %v5420_v9 = vld [vmem:[%s6884_s3 + $0x1e0] sm:$0xff]   ;;  %v5421_v15 = vld [vmem:[%s6884_s3 + $0x230] sm:$0xff]  }
 0x165   :  { %4844 = vmatprep.subr.bf16.mxu0 %v5408_v13  ;;  %4969 = vmatpush3.bf16.msra.mxu1 %v5409_v14  ;;  %v6285_v20 = vsel %vm5601_vm3, %v6156_v28, %v1934_v24  ;;  %v6289_v54 = vsel %vm5601_vm3, %v1958_v30, %v1962_v4  ;;  %v1825_v63 = vshrl.u32 %v6271_v21, 16  ;;  %v1828_v28 = vshll.u32 %v6271_v21, 16  ;;  %v1797_v13 = vld [vmem:[#allocation2 + $0x38] sm:$0x11] }
 0x166   :  { %4970 = vmatprep.subr.bf16.mxu1 %v5411_v17  ;;  %v1985_v41 = vor.u32 %v1984_v26, %v1981_v25  ;;  %v4381_v1 = vcombine.low %v1879_v0, %v1907_v50  ;;  %v1988_v22 = vshll.u32 %v1806_v58, 16  ;;  %v2013_v19 = vor.u32 %v2012_v33, %v2009_v11  ;;  %v5423_v25 = vld [vmem:[%s6884_s3 + $0x278] sm:$0xff]  }
 0x167   :  { %2806 = vmatmul.mubr.bf16.gmra.mrb[24].mxu1 %v4433_v34  ;;  %v4386_v8 = vcombine.high %v6285_v20, %v6289_v54  ;;  %v1855_v46 = vrot.slane %v1853_v2, 4  ;;  %v1858_v47 = vrot.slane %v1856_v36, 5  ;;  %v2016_v49 = vshll.u32 %v1808_v43, 16  ;;  %v1795_v30 = vld [vmem:[#allocation2 + $0x18] sm:$0x11]  ;;  %v5424_v34 = vld [vmem:[%s6884_s3 + $0x1e8] sm:$0xff]  }
 0x168   :  { %4845 = vmatpush3.bf16.msra.mxu0 %v5410_v29  ;;  %2813 = vmatprep.mubr.bf16.mxu1 %v4438_v61  ;;  %v6310_v40 = vrot.slane %v1985_v41, 4  ;;  %v1827_v62 = vrot.slane %v1825_v63, 4  ;;  %v1830_v0 = vrot.slane %v1828_v28, 5  ;;  %v1990_v12 = vrot.slane %v1988_v22, 5  ;;  %v5422_v29 = vld [vmem:[%s6884_s3 + $0x1a0] sm:$0xff]   ;;  %v5425_v36 = vld [vmem:[%s6884_s3 + $0x238] sm:$0xff]  }
 0x169   :  { %4846 = vmatprep.subr.bf16.mxu0 %v5412_v32  ;;  %4971 = vmatpush3.bf16.msra.mxu1 %v5413_v55  ;;  %v2014_v50 = vrot.slane %v2013_v19, 4  ;;  %v4437_v14 = vcombine.low %v6247_v10, %v6218_v6  ;;  %v1859_v16 = vor.u32 %v1858_v47, %v1855_v46  ;;  %v1909_v7 = vshrl.u32 %v6312_v59, 16  ;;  %v5427_v61 = vld [vmem:[%s6884_s3 + $0x340] sm:$0xff]   ;;  %v5428_v43 = vld [vmem:[%s6884_s3 + $0x1f0] sm:$0xff]   ;;  %v6366_v19 = vld [vmem:[#allocation2 + $0xa8] sm:$0xff] }
 0x16a   :  { %4972 = vmatprep.subr.bf16.mxu1 %v5415_v39  ;;  %v4538_v17 = vcombine.high %v6164_v31, %v6176_v57  ;;  %v6333_v23 = vsel %vm5601_vm3, %v6310_v40, %v1990_v12  ;;  %v2018_v24 = vrot.slane %v2016_v49, 5  ;;  %v1912_v26 = vshll.u32 %v6312_v59, 16  ;;  %v6364_v63 = vld [vmem:[#allocation2 + $0x80] sm:$0xff]  ;;  %v5430_v12 = vld [vmem:[%s6884_s3 + $0x1b0] sm:$0xff]  }
 0x16b   :  { %2396 = vmatmul.mubr.bf16.gmra.mrb[20].mxu0 %v4381_v1  ;;  %v1831_v32 = vor.u32 %v1830_v0, %v1827_v62  ;;  %v1862_v4 = vshll.u32 %v1797_v13, 16  ;;  %v4385_v11 = vcombine.low %v6285_v20, %v6289_v54  ;;  %v1881_v55 = vshrl.u32 %v6325_v5, 16  ;;  %v5431_v62 = vld [vmem:[%s6884_s3 + $0x348] sm:$0xff]  }
 0x16c   :  { %2403 = vmatprep.mubr.bf16.mxu0 %v4386_v8  ;;  %4847 = vmatpush3.bf16.msra.mxu0 %v5414_v42  ;;  %v2019_v33 = vsel %vm5601_vm3, %v2014_v50, %v2018_v24  ;;  %v1884_v58 = vshll.u32 %v6325_v5, 16  ;;  %v1834_v20 = vshll.u32 %v1795_v30, 16  ;;  %v1860_v54 = vrot.slane %v1859_v16, 4  ;;  %v5426_v42 = vld [vmem:[%s6884_s3 + $0x1a8] sm:$0xff]   ;;  %v5429_v8 = vld [vmem:[%s6884_s3 + $0x300] sm:$0xff]  }
 0x16d   :  { %4848 = vmatprep.subr.bf16.mxu0 %v5416_v35  ;;  %4973 = vmatpush3.bf16.msra.mxu1 %v5417_v45  ;;  %v4390_v2 = vcombine.high %v6333_v23, %v2019_v33  ;;  %v1911_v39 = vrot.slane %v1909_v7, 4  ;;  %v1914_v41 = vrot.slane %v1912_v26, 5  ;;  %v1832_v28 = vrot.slane %v1831_v32, 4  ;;  %v1801_v45 = vld [vmem:[#allocation2 + $0x78] sm:$0x11]  ;;  %v5433_v24 = vld [vmem:[%s6884_s3 + $0x308] sm:$0xff]  }
 0x16e   :  { %4974 = vmatprep.subr.bf16.mxu1 %v5419_v56  ;;  %v1864_v1 = vrot.slane %v1862_v4, 5  ;;  %v1883_v35 = vrot.slane %v1881_v55, 4  ;;  %v1886_v22 = vrot.slane %v1884_v58, 5  ;;  %v1965_v46 = vshrl.u32 %v6106_v48, 16  ;;  %v5435_v26 = vld [vmem:[%s6884_s3 + $0x350] sm:$0xff]   ;;  %v6402_v32 = vld [vmem:[#allocation2 + $0x108] sm:$0xff] }
 0x16f   :  { %2814 = vmatmul.mubr.bf16.gmra.mrb[28].mxu1 %v4437_v14  ;;  %v1968_v47 = vshll.u32 %v6106_v48, 16  ;;  %v4537_v56 = vcombine.low %v6164_v31, %v6176_v57  ;;  %v1836_v49 = vrot.slane %v1834_v20, 5  ;;  %v1915_v0 = vor.u32 %v1914_v41, %v1911_v39  ;;  %v1799_v31 = vld [vmem:[#allocation2 + $0x58] sm:$0x11] }
 0x170   :  { %4849 = vmatpush3.bf16.msra.mxu0 %v5418_v60  ;;  %3272 = vmatprep.mubr.bf16.mxu1 %v4538_v17  ;;  %v6377_v60 = vsel %vm5601_vm3, %v1860_v54, %v1864_v1  ;;  %v1937_v57 = vshrl.u32 %v6366_v19, 16  ;;  %v1940_v50 = vshll.u32 %v6366_v19, 16  ;;  %v4389_v13 = vcombine.low %v6333_v23, %v2019_v33  ;;  %v5434_v4 = vld [vmem:[%s6884_s3 + $0x1b8] sm:$0xff]  }
 0x171   :  { %4850 = vmatprep.subr.bf16.mxu0 %v5420_v9  ;;  %4975 = vmatpush3.bf16.msra.mxu1 %v5421_v15  ;;  %v4542_v9 = vcombine.high %v6178_v3, %v6364_v63  ;;  %v1837_v14 = vsel %vm5601_vm3, %v1832_v28, %v1836_v49  ;;  %v5432_v15 = vld [vmem:[%s6884_s3 + $0x1f8] sm:$0xff]   ;;  %v1887_v16 = vor.u32 %v1886_v22, %v1883_v35  ;;  %v1918_v7 = vshll.u32 %v1801_v45, 16  ;;  %v5438_v35 = vld [vmem:[%s6884_s3 + $0x80] sm:$0xff]  }
 0x172   :  { %4976 = vmatprep.subr.bf16.mxu1 %v5423_v25  ;;  %v4380_v17 = vcombine.high %v1837_v14, %v6377_v60  ;;  %v1967_v25 = vrot.slane %v1965_v46, 4  ;;  %v1970_v23 = vrot.slane %v1968_v47, 5  ;;  %v1916_v30 = vrot.slane %v1915_v0, 4  ;;  %v5439_v28 = vld [vmem:[%s6884_s3 + $0x358] sm:$0xff]   ;;  %v5440_v47 = vld [vmem:[%s6884_s3 + $0xc8] sm:$0xff]  }
 0x173   :  { %2404 = vmatmul.mubr.bf16.gmra.mrb[24].mxu0 %v4385_v11  ;;  %v1939_v11 = vrot.slane %v1937_v57, 4  ;;  %v1942_v33 = vrot.slane %v1940_v50, 5  ;;  %v6410_v55 = vrot.slane %v1887_v16, 4  ;;  %v1920_v58 = vrot.slane %v1918_v7, 5  ;;  %v5442_v0 = vld [vmem:[%s6884_s3 + $0x88] sm:$0xff]   ;;  %v5443_v57 = vld [vmem:[%s6884_s3 + $0x360] sm:$0xff]  }
 0x174   :  { %2411 = vmatprep.mubr.bf16.mxu0 %v4390_v2  ;;  %4851 = vmatpush3.bf16.msra.mxu0 %v5422_v29  ;;  %v1890_v29 = vshll.u32 %v1799_v31, 16  ;;  %v1805_v2 = vld [vmem:[#allocation2 + $0xd8] sm:$0x11]  ;;  %v1971_v20 = vor.u32 %v1970_v23, %v1967_v25  ;;  %v2021_v54 = vshrl.u32 %v6402_v32, 16  ;;  %v2024_v39 = vshll.u32 %v6402_v32, 16  ;;  %v5444_v50 = vld [vmem:[%s6884_s3 + $0xd0] sm:$0xff]  }
 0x175   :  { %4852 = vmatprep.subr.bf16.mxu0 %v5424_v34  ;;  %4977 = vmatpush3.bf16.msra.mxu1 %v5425_v36  ;;  %v5436_v34 = vld [vmem:[%s6884_s3 + $0xc0] sm:$0xff]   ;;  %v5437_v36 = vld [vmem:[%s6884_s3 + $0x310] sm:$0xff]   ;;  %v4541_v41 = vcombine.low %v6178_v3, %v6364_v63  ;;  %v4546_v1 = vcombine.high %v6216_v38, %v6247_v10  ;;  %v1943_v22 = vor.u32 %v1942_v33, %v1939_v11  ;;  %v1974_v3 = vshll.u32 %v1805_v2, 16  ;;  %v1807_v2 = vld [vmem:[#allocation2 + $0xf8] sm:$0x11] }
 0x176   :  { %5042 = vmatprep.subr.bf16.mxu1 %v5427_v61  ;;  %v1803_v61 = vld [vmem:[#allocation2 + $0xb8] sm:$0x11]  ;;  %v4379_v45 = vcombine.low %v1837_v14, %v6377_v60  ;;  %v1996_v49 = vshll.u32 %v6108_v51, 16  ;;  %v2026_v31 = vrot.slane %v2024_v39, 5  ;;  %v3384_v16 = vld [vmem:[#allocation2 + $0x50] sm:$0x11] }
 0x177   :  { %v5441_v60 = vld [vmem:[%s6884_s3 + $0x318] sm:$0xff]   ;;  %v1944_v14 = vrot.slane %v1943_v22, 4  ;;  %v3380_v25 = vld [vmem:[#allocation2 + $0x30] sm:$0x11]  ;;  %v5449_v22 = vld [vmem:[%s6884_s3 + $0x328] sm:$0xff]  }
 0x178   :  { %4853 = vmatpush3.bf16.msra.mxu0 %v5426_v42  ;;  %3273 = vmatmul.mubr.bf16.vlgmr.msra.gmra.mrb[32].mxu1 %v4537_v56  ;;  %v1892_v42 = vrot.slane %v1890_v29, 5  ;;  %v1946_v56 = vshll.u32 %v1803_v61, 16  ;;  %v1998_v23 = vrot.slane %v1996_v49, 5  ;;  %v3498_v29 = vshll.u32 %v6364_v63, 16  ;;  %v5446_v39 = vld [vmem:[%s6884_s3 + $0x90] sm:$0xff]   ;;  %v5450_v49 = vld [vmem:[%s6884_s3 + $0x98] sm:$0xff]  }
 0x179   :  { %4854 = vmatprep.subr.bf16.mxu0 %v5428_v43  ;;  %3280 = vmatprep.mubr.bf16.mxu1 %v4542_v9  ;;  %v6421_v43 = vsel %vm5601_vm3, %v1916_v30, %v1920_v58  ;;  %v6447_v9 = vrot.slane %v1971_v20, 4  ;;  %v5445_v30 = vld [vmem:[%s6884_s3 + $0x320] sm:$0xff]   ;;  %v3448_v58 = vshll.u32 %v3384_v16, 16 }
 0x17a   :  { %5043 = vmatpush3.bf16.msra.mxu1 %v5429_v8  ;;  %v1993_v8 = vshrl.u32 %v6108_v51, 16  ;;  %v1893_v46 = vsel %vm5601_vm3, %v6410_v55, %v1892_v42  ;;  %v5448_v42 = vld [vmem:[%s6884_s3 + $0xd8] sm:$0xff]  }
 0x17b   :  { %2412 = vmatmul.mubr.bf16.gmra.mrb[28].mxu0 %v4389_v13  ;;  %5044 = vmatprep.subr.bf16.mxu1 %v5431_v62  ;;  %v4384_v62 = vcombine.high %v1893_v46, %v6421_v43  ;;  %v1809_v13 = vld [vmem:[#allocation2 + $0x118] sm:$0x11]  ;;  %v4383_v20 = vcombine.low %v1893_v46, %v6421_v43  ;;  %v3450_v46 = vrot.slane %v3448_v58, 5 }
 0x17c   :  { %4855 = vmatpush3.bf16.msra.mxu0 %v5430_v12  ;;  %2452 = vmatprep.mubr.bf16.mxu0 %v4380_v17  ;;  %v2023_v12 = vrot.slane %v2021_v54, 4  ;;  %v1995_v7 = vrot.slane %v1993_v8, 4  ;;  %v3386_v17 = vld [vmem:[#allocation2 + $0x60] sm:$0xff] }
 0x17d   :  { %4856 = vmatprep.subr.bf16.mxu0 %v5432_v15  ;;  %v1976_v15 = vrot.slane %v1974_v3, 5  ;;  %v3470_v61 = vshll.u32 %v3386_v17, 16  ;;  %v2002_v3 = vshll.u32 %v1807_v2, 16 }
 0x17e   :  { %5045 = vmatpush3.bf16.msra.mxu1 %v5433_v24  ;;  %v6455_v24 = vld [vmem:[#allocation2 + $0x120] sm:$0xff]  ;;  %v2027_v33 = vor.u32 %v2026_v31, %v2023_v12 }
 0x17f   :  { %5046 = vmatprep.subr.bf16.mxu1 %v5435_v26  ;;  %v3495_v26 = vshrl.u32 %v6364_v63, 16  ;;  %v6465_v11 = vsel %vm5601_vm3, %v6447_v9, %v1976_v15  ;;  %v5447_v63 = vld [vmem:[%s6884_s3 + $0x368] sm:$0xff]   ;;  %v4550_v54 = vcombine.high %v6218_v6, %v6455_v24  ;;  %v3394_v12 = vld [vmem:[#allocation2 + $0xc0] sm:$0xff]  ;;  %v5453_v15 = vld [vmem:[%s6884_s3 + $0x330] sm:$0xff]  }
 0x180   :  { %4857 = vmatpush3.bf16.msra.mxu0 %v5434_v4  ;;  %3281 = vmatmul.mubr.bf16.gmra.mrb[36].mxu1 %v4541_v41  ;;  %v1948_v4 = vrot.slane %v1946_v56, 5  ;;  %v6487_v8 = vrot.slane %v2027_v33, 4  ;;  %v3472_v56 = vrot.slane %v3470_v61, 5  ;;  %v5452_v31 = vld [vmem:[%s6884_s3 + $0xe0] sm:$0xff]  }
 0x181   :  { %4922 = vmatprep.subr.bf16.mxu0 %v5436_v34  ;;  %3288 = vmatprep.mubr.bf16.mxu1 %v4546_v1  ;;  %v4545_v34 = vcombine.low %v6216_v38, %v6247_v10  ;;  %v3420_v38 = vshll.u32 %v3380_v25, 16  ;;  %v2030_v10 = vshll.u32 %v1809_v13, 16  ;;  %v3497_v43 = vrot.slane %v3495_v26, 4 }
 0x182   :  { %5047 = vmatpush3.bf16.msra.mxu1 %v5437_v36  ;;  %v3467_v36 = vshrl.u32 %v3386_v17, 16  ;;  %v1949_v41 = vsel %vm5601_vm3, %v1944_v14, %v1948_v4  ;;  %v3500_v1 = vrot.slane %v3498_v29, 5  ;;  %v4549_v14 = vcombine.low %v6218_v6, %v6455_v24  ;;  %v3388_v17 = vld [vmem:[#allocation2 + $0x70] sm:$0x11]  ;;  %v5455_v6 = vld [vmem:[%s6884_s3 + $0x378] sm:$0xff]  }
 0x183   :  { %2453 = vmatmul.mubr.bf16.vlgmr.msra.gmra.mrb[32].mxu0 %v4379_v45  ;;  %5048 = vmatprep.subr.bf16.mxu1 %v5439_v28  ;;  %v1999_v28 = vor.u32 %v1998_v23, %v1995_v7  ;;  %v5451_v45 = vld [vmem:[%s6884_s3 + $0x370] sm:$0xff]   ;;  %v2004_v7 = vrot.slane %v2002_v3, 5  ;;  %v3523_v26 = vshrl.u32 %v3394_v12, 16  ;;  %v3526_v29 = vshll.u32 %v3394_v12, 16  ;;  %v6551_v3 = vld [vmem:[%s6884_s3 + $0x380] sm:$0xff]  }
 0x184   :  { %2460 = vmatprep.mubr.bf16.mxu0 %v4384_v62  ;;  %4923 = vmatpush3.bf16.msra.mxu0 %v5438_v35  ;;  %v4388_v35 = vcombine.high %v1949_v41, %v6465_v11  ;;  %v3422_v62 = vrot.slane %v3420_v38, 5  ;;  %v3501_v13 = vor.u32 %v3500_v1, %v3497_v43  ;;  %v4387_v4 = vcombine.low %v1949_v41, %v6465_v11  ;;  %v6536_v11 = vld [vmem:[%s6884_s3 + $0x3c0] sm:$0xff]  }
 0x185   :  { %4924 = vmatprep.subr.bf16.mxu0 %v5440_v47  ;;  %v3469_v47 = vrot.slane %v3467_v36, 4  ;;  %v5457_v36 = vld [vmem:[%s6884_s3 + $0x338] sm:$0xff]   ;;  %v3528_v38 = vrot.slane %v3526_v29, 5  ;;  %v3402_v41 = vld [vmem:[#allocation2 + $0x100] sm:$0xff]  ;;  %v3607_v1 = vshrl.u32 %v6455_v24, 16 }
 0x186   :  { %5049 = vmatpush3.bf16.msra.mxu1 %v5441_v60  ;;  %v2032_v60 = vrot.slane %v2030_v10, 5  ;;  %v3423_v16 = vsel %vm5601_vm3, %v6225_v18, %v3422_v62  ;;  %v5454_v18 = vld [vmem:[%s6884_s3 + $0xa0] sm:$0xff]   ;;  %v3502_v58 = vrot.slane %v3501_v13, 4  ;;  %v5458_v10 = vld [vmem:[%s6884_s3 + $0xa8] sm:$0xff]   ;;  %v3582_v62 = vshll.u32 %v3402_v41, 16 }
 0x187   :  { %5050 = vmatprep.subr.bf16.mxu1 %v5443_v57  ;;  %v3451_v57 = vsel %vm5601_vm3, %v6235_v44, %v3450_v46  ;;  %v3473_v25 = vor.u32 %v3472_v56, %v3469_v47  ;;  %v6559_v56 = vld [vmem:[%s6884_s3 + $0x3c8] sm:$0xff]   ;;  %v3609_v13 = vrot.slane %v3607_v1, 4  ;;  %v5468_v29 = vld [vmem:[%s6884_s3 + $0x2c0] sm:$0xff]   ;;  %v6623_v1 = vld [vmem:[%s6884_s3 + $0x398] sm:$0xff]  }
 0x188   :  { %4925 = vmatpush3.bf16.msra.mxu0 %v5442_v0  ;;  %3289 = vmatmul.mubr.bf16.gmra.mrb[40].mxu1 %v4545_v34  ;;  %v3392_v0 = vld [vmem:[#allocation2 + $0x90] sm:$0x11]  ;;  %v6514_v44 = vsel %vm5601_vm3, %v6487_v8, %v2032_v60  ;;  %v5456_v34 = vld [vmem:[%s6884_s3 + $0xe8] sm:$0xff]  }
 0x189   :  { %4926 = vmatprep.subr.bf16.mxu0 %v5444_v50  ;;  %3296 = vmatprep.mubr.bf16.mxu1 %v4550_v54  ;;  %v6501_v50 = vrot.slane %v1999_v28, 4  ;;  %v3504_v23 = vshll.u32 %v3392_v0, 16  ;;  %v3474_v61 = vrot.slane %v3473_v25, 4  ;;  %v3400_v54 = vld [vmem:[#allocation2 + $0xf0] sm:$0x11]  ;;  %v3584_v25 = vrot.slane %v3582_v62, 5 }
 0x18a   :  { %5051 = vmatpush3.bf16.msra.mxu1 %v5445_v30  ;;  %v4650_v30 = vcombine.high %v3423_v16, %v3451_v57  ;;  %v3560_v46 = vshll.u32 %v3400_v54, 16  ;;  %v5462_v0 = vld [vmem:[%s6884_s3 + $0xb0] sm:$0xff]  }
 0x18b   :  { %2461 = vmatmul.mubr.bf16.gmra.mrb[36].mxu0 %v4383_v20  ;;  %5052 = vmatprep.subr.bf16.mxu1 %v5447_v63  ;;  %v2005_v33 = vsel %vm5601_vm3, %v6501_v50, %v2004_v7  ;;  %v3476_v63 = vshll.u32 %v3388_v17, 16  ;;  %v3506_v20 = vrot.slane %v3504_v23, 5  ;;  %v6580_v7 = vld [vmem:[%s6884_s3 + $0x3d0] sm:$0xff]   ;;  %v5466_v23 = vld [vmem:[%s6884_s3 + $0xb8] sm:$0xff]  }
 0x18c   :  { %2468 = vmatprep.mubr.bf16.mxu0 %v4388_v35  ;;  %4927 = vmatpush3.bf16.msra.mxu0 %v5446_v39  ;;  %v4392_v2 = vcombine.high %v2005_v33, %v6514_v44  ;;  %v3525_v39 = vrot.slane %v3523_v26, 4  ;;  %v3610_v35 = vshll.u32 %v6455_v24, 16  ;;  %v4391_v12 = vcombine.low %v2005_v33, %v6514_v44  ;;  %v3408_v26 = vld [vmem:[#allocation2 + $0x130] sm:$0x11] }
 0x18d   :  { %4928 = vmatprep.subr.bf16.mxu0 %v5448_v42  ;;  %v5460_v42 = vld [vmem:[%s6884_s3 + $0xf0] sm:$0xff]   ;;  %v3478_v28 = vrot.slane %v3476_v63, 5  ;;  %v3507_v43 = vsel %vm5601_vm3, %v3502_v58, %v3506_v20  ;;  %v3562_v17 = vrot.slane %v3560_v46, 5  ;;  %v6597_v63 = vld [vmem:[#allocation2] sm:$0xff]  ;;  %v3616_v54 = vshll.u32 %v3408_v26, 16  ;;  %v5497_v26 = vld [vmem:[#allocation2 + $0xc8] sm:$0xff] }
 0x18e   :  { %5053 = vmatpush3.bf16.msra.mxu1 %v5449_v22  ;;  %v4649_v22 = vcombine.low %v3423_v16, %v3451_v57  ;;  %v3529_v24 = vor.u32 %v3528_v38, %v3525_v39  ;;  %v6574_v16 = vld [vmem:[%s6884_s3 + $0x388] sm:$0xff]   ;;  %v6595_v33 = vld [vmem:[%s6884_s3 + $0x390] sm:$0xff]   ;;  %v3621_v58 = vshrl.u32 %v6597_v63, 16  ;;  %v5470_v38 = vld [vmem:[%s6884_s3 + $0x280] sm:$0xff]   ;;  %v4551_v48 = vcombine.low %v6402_v32, %v6597_v63 }
 0x18f   :  { %5054 = vmatprep.subr.bf16.mxu1 %v5451_v45  ;;  %v3396_v45 = vld [vmem:[#allocation2 + $0xd0] sm:$0x11]  ;;  %v3479_v47 = vsel %vm5601_vm3, %v3474_v61, %v3478_v28  ;;  %v6607_v61 = vld [vmem:[%s6884_s3 + $0x3d8] sm:$0xff]  }
 0x190   :  { %4929 = vmatpush3.bf16.msra.mxu0 %v5450_v49  ;;  %3297 = vmatmul.mubr.bf16.gmra.mrb[44].mxu1 %v4549_v14  ;;  %v3579_v49 = vshrl.u32 %v3402_v41, 16  ;;  %v4654_v60 = vcombine.high %v3479_v47, %v3507_v43  ;;  %v3532_v57 = vshll.u32 %v3396_v45, 16  ;;  %v3612_v14 = vrot.slane %v3610_v35, 5  ;;  %v5472_v41 = vld [vmem:[%s6884_s3 + $0x2c8] sm:$0xff]   ;;  %v3409_v35 = vld [vmem:[#allocation2 + $0x138] sm:$0x11] }
 0x191   :  { %4930 = vmatprep.subr.bf16.mxu0 %v5452_v31  ;;  %3987 = vmatprep.mubr.bf16.mxu1 %v4650_v30  ;;  %v5464_v31 = vld [vmem:[%s6884_s3 + $0xf8] sm:$0xff]   ;;  %v3530_v44 = vrot.slane %v3529_v24, 4  ;;  %v3623_v45 = vrot.slane %v3621_v58, 4 }
 0x192   :  { %5055 = vmatpush3.bf16.msra.mxu1 %v5453_v15  ;;  %v4428_v15 = vcombine.high %v6271_v21, %v6263_v27  ;;  %v3534_v30 = vrot.slane %v3532_v57, 5  ;;  %v3405_v24 = vld [vmem:[#allocation2 + $0x118] sm:$0x11] }
 0x193   :  { %2469 = vmatmul.mubr.bf16.gmra.mrb[40].mxu0 %v4387_v4  ;;  %5056 = vmatprep.subr.bf16.mxu1 %v5455_v6  ;;  %v3581_v6 = vrot.slane %v3579_v49, 4  ;;  %v3613_v4 = vor.u32 %v3612_v14, %v3609_v13  ;;  %v5476_v49 = vld [vmem:[%s6884_s3 + $0x2d0] sm:$0xff]   ;;  %v6651_v13 = vld [vmem:[%s6884_s3 + $0x3e8] sm:$0xff]   ;;  %v3602_v14 = vshll.u32 %v3405_v24, 16  ;;  %v5482_v58 = vld [vmem:[%s6884_s3 + $0x298] sm:$0xff]  }
 0x194   :  { %2476 = vmatprep.mubr.bf16.mxu0 %v4392_v2  ;;  %4931 = vmatpush3.bf16.msra.mxu0 %v5454_v18  ;;  %v3563_v18 = vsel %vm5601_vm3, %v6310_v40, %v3562_v17  ;;  %v3624_v2 = vshll.u32 %v6597_v63, 16  ;;  %v3535_v40 = vsel %vm5601_vm3, %v3530_v44, %v3534_v30  ;;  %v5478_v17 = vld [vmem:[%s6884_s3 + $0x290] sm:$0xff]   ;;  %v6666_v30 = vld [vmem:[%s6884_s3 + $0x3a8] sm:$0xff]  }
 0x195   :  { %4932 = vmatprep.subr.bf16.mxu0 %v5456_v34  ;;  %v3404_v34 = vld [vmem:[#allocation2 + $0x110] sm:$0x11]  ;;  %v3585_v20 = vor.u32 %v3584_v25, %v3581_v6  ;;  %v4658_v39 = vcombine.high %v3535_v40, %v3563_v18  ;;  %v3614_v28 = vrot.slane %v3613_v4, 4  ;;  %v4431_v6 = vcombine.low %v6325_v5, %v6312_v59  ;;  %v5480_v25 = vld [vmem:[%s6884_s3 + $0x2d8] sm:$0xff]  }
 0x196   :  { %5057 = vmatpush3.bf16.msra.mxu1 %v5457_v36  ;;  %v4653_v36 = vcombine.low %v3479_v47, %v3507_v43  ;;  %v4432_v43 = vcombine.high %v6325_v5, %v6312_v59  ;;  %v3626_v46 = vrot.slane %v3624_v2, 5  ;;  %v5474_v47 = vld [vmem:[%s6884_s3 + $0x288] sm:$0xff]   ;;  %v3604_v4 = vrot.slane %v3602_v14, 5  ;;  %v5484_v2 = vld [vmem:[%s6884_s3 + $0x2e0] sm:$0xff]  }
 0x197   :  { %5266 = vmatprep.subr.bf16.mxu1 %v6536_v11 }
 0x198   :  { %4933 = vmatpush3.bf16.msra.mxu0 %v5458_v10  ;;  %v4427_v10 = vcombine.low %v6271_v21, %v6263_v27  ;;  %v6629_v27 = vld [vmem:[%s6884_s3 + $0x3e0] sm:$0xff]   ;;  %v3586_v21 = vrot.slane %v3585_v20, 4  ;;  %v6692_v20 = vld [vmem:[%s6884_s3 + $0x3b0] sm:$0xff]  }
 0x199   :  { %3988 = vmatmul.mubr.bf16.vlgmr.msra.gmra.mrb[48].mxu1 %v4649_v22  ;;  %4934 = vmatprep.subr.bf16.mxu0 %v5460_v42  ;;  %v3588_v42 = vshll.u32 %v3404_v34, 16  ;;  %v3618_v22 = vrot.slane %v3616_v54, 5 }
 0x19a   :  { %3995 = vmatprep.mubr.bf16.mxu1 %v4654_v60  ;;  %5274 = vmatpush3.bf16.msra.mxu1 %v6551_v3 }
 0x19b   :  { %2477 = vmatmul.mubr.bf16.gmra.mrb[44].mxu0 %v4391_v12  ;;  %5267 = vmatprep.subr.bf16.mxu1 %v6559_v56  ;;  %v3590_v62 = vrot.slane %v3588_v42, 5  ;;  %v3619_v60 = vsel %vm5601_vm3, %v3614_v28, %v3618_v22  ;;  %v6643_v12 = vld [vmem:[%s6884_s3 + $0x3a0] sm:$0xff]   ;;  %v5498_v42 = vld [vmem:[#allocation2 + $0xe8] sm:$0xff] }
 0x19c   :  { %4935 = vmatpush3.bf16.msra.mxu0 %v5462_v0  ;;  %2854 = vmatprep.mubr.bf16.mxu0 %v4428_v15  ;;  %v3630_v0 = vshll.u32 %v3409_v35, 16  ;;  %v3627_v15 = vor.u32 %v3626_v46, %v3623_v45  ;;  %v4440_v28 = vcombine.high %v5498_v42, %v6402_v32  ;;  %v5491_v35 = vld [vmem:[%s6884_s3 + $0x2f0] sm:$0xff]   ;;  %v2888_v22 = vld [vmem:[#allocation2 + $0x28] sm:$0xff]  ;;  %v4439_v46 = vcombine.low %v5498_v42, %v6402_v32 }
 0x19d   :  { %4936 = vmatprep.subr.bf16.mxu0 %v5464_v31  ;;  %v4657_v31 = vcombine.low %v3535_v40, %v3563_v18  ;;  %v3591_v57 = vsel %vm5601_vm3, %v3586_v21, %v3590_v62  ;;  %v6672_v18 = vld [vmem:[%s6884_s3 + $0x3f0] sm:$0xff]   ;;  %v4540_v24 = vcombine.high %v2888_v22, %v6325_v5  ;;  %v4539_v62 = vcombine.low %v2888_v22, %v6325_v5 }
 0x19e   :  { %5275 = vmatpush3.bf16.msra.mxu1 %v6574_v16  ;;  %v4662_v44 = vcombine.high %v3591_v57, %v3619_v60  ;;  %v6674_v34 = vrot.slane %v3627_v15, 4  ;;  %v4661_v54 = vcombine.low %v3591_v57, %v3619_v60  ;;  %v5492_v45 = vld [vmem:[%s6884_s3 + $0x2b0] sm:$0xff]   ;;  %v4544_v60 = vcombine.high %v6312_v59, %v6597_v63 }
 0x19f   :  { %5268 = vmatprep.subr.bf16.mxu1 %v6580_v7  ;;  %v4543_v57 = vcombine.low %v6312_v59, %v6597_v63  ;;  %v3385_v59 = vld [vmem:[#allocation2 + $0x58] sm:$0x11] }
 0x1a0   :  { %4937 = vmatpush3.bf16.msra.mxu0 %v5466_v23  ;;  %v3632_v23 = vrot.slane %v3630_v0, 5  ;;  %v3425_v0 = vshrl.u32 %v2888_v22, 16 }
 0x1a1   :  { %3996 = vmatmul.mubr.bf16.gmra.mrb[52].mxu1 %v4653_v36  ;;  %5002 = vmatprep.subr.bf16.mxu0 %v5468_v29  ;;  %v4436_v29 = vcombine.high %v6366_v19, %v5497_v26  ;;  %v3605_v36 = vsel %vm5601_vm3, %v6487_v8, %v3604_v4 }
 0x1a2   :  { %4003 = vmatprep.mubr.bf16.mxu1 %v4658_v39  ;;  %5276 = vmatpush3.bf16.msra.mxu1 %v6595_v33  ;;  %v3633_v40 = vsel %vm5601_vm3, %v6674_v34, %v3632_v23  ;;  %v6698_v39 = vld [vmem:[%s6884_s3 + $0x3f8] sm:$0xff]   ;;  %v3427_v5 = vrot.slane %v3425_v0, 4 }
 0x1a3   :  { %2855 = vmatmul.mubr.bf16.vlgmr.msra.gmra.mrb[48].mxu0 %v4427_v10  ;;  %5269 = vmatprep.subr.bf16.mxu1 %v6607_v61  ;;  %v4664_v8 = vcombine.high %v3605_v36, %v3633_v40  ;;  %v4435_v10 = vcombine.low %v6366_v19, %v5497_v26  ;;  %v5490_v19 = vld [vmem:[%s6884_s3 + $0x2a8] sm:$0xff]   ;;  %v4663_v21 = vcombine.low %v3605_v36, %v3633_v40 }
 0x1a4   :  { %2862 = vmatprep.mubr.bf16.mxu0 %v4432_v43  ;;  %5003 = vmatpush3.bf16.msra.mxu0 %v5470_v38  ;;  %v5486_v38 = vld [vmem:[%s6884_s3 + $0x2a0] sm:$0xff]   ;;  %v6712_v43 = vld [vmem:[%s6884_s3 + $0x3b8] sm:$0xff]  }
 0x1a5   :  { %5004 = vmatprep.subr.bf16.mxu0 %v5472_v41  ;;  %v5488_v41 = vld [vmem:[%s6884_s3 + $0x2e8] sm:$0xff]  }
 0x1a6   :  { %5277 = vmatpush3.bf16.msra.mxu1 %v6623_v1 }
 0x1a7   :  { %5270 = vmatprep.subr.bf16.mxu1 %v6629_v27 }
 0x1a8   :  { %5005 = vmatpush3.bf16.msra.mxu0 %v5474_v47  ;;  %v5493_v47 = vld [vmem:[%s6884_s3 + $0x2f8] sm:$0xff]  }
 0x1a9   :  { %4004 = vmatmul.mubr.bf16.gmra.mrb[56].mxu1 %v4657_v31  ;;  %5006 = vmatprep.subr.bf16.mxu0 %v5476_v49  ;;  %v5494_v49 = vld [vmem:[%s6884_s3 + $0x2b8] sm:$0xff]   ;;  %v3428_v31 = vshll.u32 %v2888_v22, 16 }
 0x1aa   :  { %4011 = vmatprep.mubr.bf16.mxu1 %v4662_v44  ;;  %5278 = vmatpush3.bf16.msra.mxu1 %v6643_v12  ;;  %v4552_v44 = vcombine.high %v6402_v32, %v6597_v63 }
 0x1ab   :  { %2863 = vmatmul.mubr.bf16.gmra.mrb[52].mxu0 %v4431_v6  ;;  %5271 = vmatprep.subr.bf16.mxu1 %v6651_v13  ;;  %v3393_v6 = vld [vmem:[#allocation2 + $0x98] sm:$0x11] }
 0x1ac   :  { %2870 = vmatprep.mubr.bf16.mxu0 %v4436_v29  ;;  %5007 = vmatpush3.bf16.msra.mxu0 %v5478_v17  ;;  %v3518_v29 = vshll.u32 %v3393_v6, 16 }
 0x1ad   :  { %5008 = vmatprep.subr.bf16.mxu0 %v5480_v25 }
 0x1ae   :  { %5279 = vmatpush3.bf16.msra.mxu1 %v6666_v30  ;;  %v3520_v4 = vrot.slane %v3518_v29, 5 }
 0x1af   :  { %5272 = vmatprep.subr.bf16.mxu1 %v6672_v18 }
 0x1b0   :  { %5009 = vmatpush3.bf16.msra.mxu0 %v5482_v58  ;;  %v3397_v58 = vld [vmem:[#allocation2 + $0xd8] sm:$0x11]  ;;  %v3521_v63 = vsel %vm5601_vm3, %v6674_v34, %v3520_v4 }
 0x1b1   :  { %4012 = vmatmul.mubr.bf16.gmra.mrb[60].mxu1 %v4661_v54  ;;  %5010 = vmatprep.subr.bf16.mxu0 %v5484_v2  ;;  %v3546_v2 = vshll.u32 %v3397_v58, 16 }
 0x1b2   :  { %5280 = vmatpush3.bf16.msra.mxu1 %v6692_v20  ;;  %4076 = vmatprep.mubr.bf16.mxu1 %v4664_v8 }
 0x1b3   :  { %2871 = vmatmul.mubr.bf16.gmra.mrb[56].mxu0 %v4435_v10  ;;  %5273 = vmatprep.subr.bf16.mxu1 %v6698_v39 }
 0x1b4   :  { %2878 = vmatprep.mubr.bf16.mxu0 %v4440_v28  ;;  %5011 = vmatpush3.bf16.msra.mxu0 %v5486_v38 }
 0x1b5   :  { %5012 = vmatprep.subr.bf16.mxu0 %v5488_v41 }
 0x1b6   :  { %5281 = vmatpush3.bf16.msra.mxu1 %v6712_v43 }
 0x1b8   :  { %5013 = vmatpush3.bf16.msra.mxu0 %v5490_v19 }
 0x1b9   :  { %4077 = vmatmul.mubr.bf16.vlgmr.msra.gmra.mrb[64].mxu1 %v4663_v21  ;;  %5014 = vmatprep.subr.bf16.mxu0 %v5491_v35 }
 0x1bb   :  { %2879 = vmatmul.mubr.bf16.gmra.mrb[60].mxu0 %v4439_v46 }
 0x1bc   :  { %5015 = vmatpush3.bf16.msra.mxu0 %v5492_v45  ;;  %3337 = vmatprep.mubr.bf16.mxu0 %v4540_v24 }
 0x1bd   :  { %5016 = vmatprep.subr.bf16.mxu0 %v5493_v47 }
 0x1c0   :  { %5017 = vmatpush3.bf16.msra.mxu0 %v5494_v49 }
 0x1c1   :  { %5082 = vmatprep.subr.bf16.mxu0 %v6536_v11  ;;  %v3430_v11 = vrot.slane %v3428_v31, 5 }
 0x1c3   :  { %3338 = vmatmul.mubr.bf16.vlgmr.msra.gmra.mrb[64].mxu0 %v4539_v62  ;;  %v3431_v14 = vor.u32 %v3430_v11, %v3427_v5 }
 0x1c4   :  { %3345 = vmatprep.mubr.bf16.mxu0 %v4544_v60  ;;  %5083 = vmatpush3.bf16.msra.mxu0 %v6551_v3  ;;  %v3387_v3 = vld [vmem:[#allocation2 + $0x68] sm:$0xff] }
 0x1c5   :  { %5084 = vmatprep.subr.bf16.mxu0 %v6559_v56  ;;  %v3381_v56 = vld [vmem:[#allocation2 + $0x38] sm:$0x11]  ;;  %v3484_v15 = vshll.u32 %v3387_v3, 16 }
 0x1c7   :  { %v3486_v17 = vrot.slane %v3484_v15, 5 }
 0x1c8   :  { %5085 = vmatpush3.bf16.msra.mxu0 %v6574_v16  ;;  %v3481_v16 = vshrl.u32 %v3387_v3, 16 }
 0x1c9   :  { %5086 = vmatprep.subr.bf16.mxu0 %v6580_v7  ;;  %v3434_v7 = vshll.u32 %v3381_v56, 16 }
 0x1cb   :  { %3346 = vmatmul.mubr.bf16.gmra.mrb[68].mxu0 %v4543_v57 }
 0x1cc   :  { %3353 = vmatprep.mubr.bf16.mxu0 %v4548_v52  ;;  %5087 = vmatpush3.bf16.msra.mxu0 %v6595_v33  ;;  %v3432_v52 = vrot.slane %v3431_v14, 4  ;;  %v3462_v33 = vshll.u32 %v3385_v59, 16 }
 0x1cd   :  { %5088 = vmatprep.subr.bf16.mxu0 %v6607_v61  ;;  %v3483_v61 = vrot.slane %v3481_v16, 4 }
 0x1ce   :  { %v3464_v23 = vrot.slane %v3462_v33, 5 }
 0x1cf   :  { %v3487_v26 = vor.u32 %v3486_v17, %v3483_v61 }
 0x1d0   :  { %5089 = vmatpush3.bf16.msra.mxu0 %v6623_v1  ;;  %v3436_v1 = vrot.slane %v3434_v7, 5  ;;  %v3465_v51 = vsel %vm5601_vm3, %v6410_v55, %v3464_v23  ;;  %v3401_v55 = vld [vmem:[#allocation2 + $0xf8] sm:$0x11] }
 0x1d1   :  { %5090 = vmatprep.subr.bf16.mxu0 %v6629_v27  ;;  %v3389_v27 = vld [vmem:[#allocation2 + $0x78] sm:$0x11]  ;;  %v3574_v40 = vshll.u32 %v3401_v55, 16 }
 0x1d2   :  { %v3437_v25 = vsel %vm5601_vm3, %v3432_v52, %v3436_v1 }
 0x1d3   :  { %3354 = vmatmul.mubr.bf16.gmra.mrb[72].mxu0 %v4547_v53  ;;  %v3490_v53 = vshll.u32 %v3389_v27, 16 }
 0x1d4   :  { %3361 = vmatprep.mubr.bf16.mxu0 %v4552_v44  ;;  %5091 = vmatpush3.bf16.msra.mxu0 %v6643_v12  ;;  %v4652_v12 = vcombine.high %v3437_v25, %v3465_v51 }
 0x1d5   :  { %5092 = vmatprep.subr.bf16.mxu0 %v6651_v13  ;;  %v3488_v13 = vrot.slane %v3487_v26, 4 }
 0x1d8   :  { %5093 = vmatpush3.bf16.msra.mxu0 %v6666_v30  ;;  %v3492_v30 = vrot.slane %v3490_v53, 5 }
 0x1d9   :  { %5094 = vmatprep.subr.bf16.mxu0 %v6672_v18  ;;  %v4651_v18 = vcombine.low %v3437_v25, %v3465_v51 }
 0x1da   :  { %v3493_v32 = vsel %vm5601_vm3, %v3488_v13, %v3492_v30 }
 0x1db   :  { %3362 = vmatmul.mubr.bf16.gmra.mrb[76].mxu0 %v4551_v48  ;;  %v4656_v36 = vcombine.high %v3493_v32, %v3521_v63  ;;  %v4655_v8 = vcombine.low %v3493_v32, %v3521_v63 }
 0x1dc   :  { %5095 = vmatpush3.bf16.msra.mxu0 %v6692_v20  ;;  %4052 = vmatprep.mubr.bf16.mxu0 %v4652_v12  ;;  %v3548_v20 = vrot.slane %v3546_v2, 5 }
 0x1dd   :  { %5096 = vmatprep.subr.bf16.mxu0 %v6698_v39  ;;  %v3576_v39 = vrot.slane %v3574_v40, 5 }
 0x1de   :  { %v3549_v54 = vsel %vm5601_vm3, %v6447_v9, %v3548_v20 }
 0x1df   :  { %v3577_v34 = vsel %vm5601_vm3, %v6501_v50, %v3576_v39 }
 0x1e0   :  { %5097 = vmatpush3.bf16.msra.mxu0 %v6712_v43  ;;  %v4660_v38 = vcombine.high %v3549_v54, %v3577_v34  ;;  %v4659_v10 = vcombine.low %v3549_v54, %v3577_v34 }
 0x1e3   :  { %4053 = vmatmul.mubr.bf16.vlgmr.msra.gmra.mrb[80].mxu0 %v4651_v18 }
 0x1e4   :  { %4060 = vmatprep.mubr.bf16.mxu0 %v4656_v36 }
 0x1eb   :  { %4061 = vmatmul.mubr.bf16.gmra.mrb[84].mxu0 %v4655_v8 }
 0x1ec   :  { %4068 = vmatprep.mubr.bf16.mxu0 %v4660_v38 }
 0x1f3   :  { %4069 = vmatmul.mubr.bf16.gmra.mrb[88].mxu0 %v4659_v10 }
 0x22a   :  { %v4898_v41 = vpop.f32.mrb[16].mxu1 }
 0x22b   :  { %v4899_v42 = vpop.f32.mrb[17].mxu1 }
 0x22c   :  { %v6780_v28 = vadd.f32 %v4899_v42, %v4898_v41  ;;  %v4901_v43 = vpop.f32.mrb[18].mxu1 }
 0x22d   :  { %v4902_v19 = vpop.f32.mrb[19].mxu1 }
 0x22e   :  { %v6782_v35 = vadd.f32 %v4902_v19, %v4901_v43 }
 0x232   :  { %v4904_v9 = vpop.f32.mrb[20].mxu1 }
 0x233   :  { %v4905_v21 = vpop.f32.mrb[21].mxu1 }
 0x234   :  { %v6784_v22 = vadd.f32 %v4905_v21, %v4904_v9  ;;  %v4907_v45 = vpop.f32.mrb[22].mxu1 }
 0x235   :  { %v4908_v50 = vpop.f32.mrb[23].mxu1 }
 0x236   :  { %v4818_v37 = vpop.f32.mrb[16].mxu0  ;;  %v6786_v47 = vadd.f32 %v4908_v50, %v4907_v45 }
 0x237   :  { %v4819_v46 = vpop.f32.mrb[17].mxu0 }
 0x238   :  { %v4820_v24 = vadd.f32 %v4819_v46, %v4818_v37  ;;  %v4821_v49 = vpop.f32.mrb[18].mxu0 }
 0x239   :  { %v4822_v62 = vpop.f32.mrb[19].mxu0 }
 0x23a   :  { %v4823_v60 = vadd.f32 %v4822_v62, %v4821_v49  ;;  %v4910_v0 = vpop.f32.mrb[24].mxu1 }
 0x23b   :  { %v4911_v31 = vpop.f32.mrb[25].mxu1 }
 0x23c   :  { %v6788_v57 = vadd.f32 %v4911_v31, %v4910_v0  ;;  %v4913_v5 = vpop.f32.mrb[26].mxu1 }
 0x23d   :  { %v4914_v3 = vpop.f32.mrb[27].mxu1 }
 0x23e   :  { %v4824_v11 = vpop.f32.mrb[20].mxu0  ;;  %v6790_v14 = vadd.f32 %v4914_v3, %v4913_v5 }
 0x23f   :  { %v4825_v56 = vpop.f32.mrb[21].mxu0 }
 0x240   :  { %v4826_v16 = vadd.f32 %v4825_v56, %v4824_v11  ;;  %v4827_v15 = vpop.f32.mrb[22].mxu0 }
 0x241   :  { %v4828_v59 = vpop.f32.mrb[23].mxu0 }
 0x242   :  { %v4829_v7 = vadd.f32 %v4828_v59, %v4827_v15  ;;  %v4916_v44 = vpop.f32.mrb[28].mxu1 }
 0x243   :  { %v4917_v52 = vpop.f32.mrb[29].mxu1 }
 0x244   :  { %v6792_v33 = vadd.f32 %v4917_v52, %v4916_v44  ;;  %v4919_v61 = vpop.f32.mrb[30].mxu1 }
 0x245   :  { %v4920_v6 = vpop.f32.mrb[31].mxu1 }
 0x246   :  { %v4830_v17 = vpop.f32.mrb[24].mxu0  ;;  %v6794_v27 = vadd.f32 %v4920_v6, %v4919_v61 }
 0x247   :  { %v4831_v1 = vpop.f32.mrb[25].mxu0 }
 0x248   :  { %v4832_v25 = vadd.f32 %v4831_v1, %v4830_v17  ;;  %v4833_v23 = vpop.f32.mrb[26].mxu0 }
 0x249   :  { %v4834_v26 = vpop.f32.mrb[27].mxu0 }
 0x24a   :  { %v4835_v29 = vadd.f32 %v4834_v26, %v4833_v23 }
 0x24b   :  { %v4978_v48 = vpop.f32.mrb[32].mxu1 }
 0x24c   :  { %v4979_v51 = vpop.f32.mrb[33].mxu1 }
 0x24d   :  { %v6796_v12 = vadd.f32 %v4979_v51, %v4978_v48  ;;  %v4981_v13 = vpop.f32.mrb[34].mxu1 }
 0x24e   :  { %v4836_v53 = vpop.f32.mrb[28].mxu0  ;;  %v4982_v30 = vpop.f32.mrb[35].mxu1 }
 0x24f   :  { %v4837_v4 = vpop.f32.mrb[29].mxu0  ;;  %v6800_v63 = vadd.f32 %v4982_v30, %v4981_v13 }
 0x250   :  { %v6798_v58 = vadd.f32 %v4837_v4, %v4836_v53  ;;  %v4839_v32 = vpop.f32.mrb[30].mxu0 }
 0x251   :  { %v4840_v55 = vpop.f32.mrb[31].mxu0 }
 0x252   :  { %v4841_v18 = vadd.f32 %v4840_v55, %v4839_v32 }
 0x253   :  { %v4984_v2 = vpop.f32.mrb[36].mxu1 }
 0x254   :  { %v4985_v36 = vpop.f32.mrb[37].mxu1 }
 0x255   :  { %v6802_v20 = vadd.f32 %v4985_v36, %v4984_v2  ;;  %v4987_v54 = vpop.f32.mrb[38].mxu1 }
 0x256   :  { %v4858_v40 = vpop.f32.mrb[32].mxu0  ;;  %v4988_v8 = vpop.f32.mrb[39].mxu1 }
 0x257   :  { %v4859_v39 = vpop.f32.mrb[33].mxu0  ;;  %v6804_v10 = vadd.f32 %v4988_v8, %v4987_v54 }
 0x258   :  { %v4860_v34 = vadd.f32 %v4859_v39, %v4858_v40  ;;  %v4861_v38 = vpop.f32.mrb[34].mxu0 }
 0x259   :  { %v4862_v41 = vpop.f32.mrb[35].mxu0 }
 0x25a   :  { %v2455_v42 = vadd.f32 %v4860_v34, %v4820_v24  ;;  %v4863_v43 = vadd.f32 %v4862_v41, %v4861_v38 }
 0x25b   :  { %v4990_v9 = vpop.f32.mrb[40].mxu1 }
 0x25c   :  { %v2458_v19 = vadd.f32 %v4863_v43, %v4823_v60  ;;  %v2792_v21 = vadd.f32 %v6780_v28, %v2455_v42  ;;  %v4991_v45 = vpop.f32.mrb[41].mxu1 }
 0x25d   :  { %v6807_v50 = vadd.f32 %v4991_v45, %v4990_v9  ;;  %v4993_v46 = vpop.f32.mrb[42].mxu1 }
 0x25e   :  { %v4864_v37 = vpop.f32.mrb[36].mxu0  ;;  %v2795_v49 = vadd.f32 %v6782_v35, %v2458_v19  ;;  %v4994_v0 = vpop.f32.mrb[43].mxu1 }
 0x25f   :  { %v4865_v62 = vpop.f32.mrb[37].mxu0  ;;  %v6810_v11 = vadd.f32 %v4994_v0, %v4993_v46 }
 0x260   :  { %v4866_v31 = vadd.f32 %v4865_v62, %v4864_v37  ;;  %v4867_v5 = vpop.f32.mrb[38].mxu0 }
 0x261   :  { %v4868_v3 = vpop.f32.mrb[39].mxu0 }
 0x262   :  { %v2463_v24 = vadd.f32 %v4866_v31, %v4826_v16  ;;  %v4869_v56 = vadd.f32 %v4868_v3, %v4867_v5 }
 0x263   :  { %v4996_v15 = vpop.f32.mrb[44].mxu1 }
 0x264   :  { %v2466_v60 = vadd.f32 %v4869_v56, %v4829_v7  ;;  %v2800_v28 = vadd.f32 %v6784_v22, %v2463_v24  ;;  %v4997_v59 = vpop.f32.mrb[45].mxu1 }
 0x265   :  { %v6813_v52 = vadd.f32 %v4997_v59, %v4996_v15  ;;  %v4999_v61 = vpop.f32.mrb[46].mxu1 }
 0x266   :  { %v4870_v44 = vpop.f32.mrb[40].mxu0  ;;  %v2803_v35 = vadd.f32 %v6786_v47, %v2466_v60  ;;  %v5000_v6 = vpop.f32.mrb[47].mxu1 }
 0x267   :  { %v4871_v17 = vpop.f32.mrb[41].mxu0  ;;  %v6816_v26 = vadd.f32 %v5000_v6, %v4999_v61 }
 0x268   :  { %v4872_v1 = vadd.f32 %v4871_v17, %v4870_v44  ;;  %v4873_v23 = vpop.f32.mrb[42].mxu0 }
 0x269   :  { %v4874_v48 = vpop.f32.mrb[43].mxu0 }
 0x26a   :  { %v2471_v16 = vadd.f32 %v4872_v1, %v4832_v25  ;;  %v4875_v51 = vadd.f32 %v4874_v48, %v4873_v23 }
 0x26c   :  { %v2474_v7 = vadd.f32 %v4875_v51, %v4835_v29  ;;  %v5058_v53 = vpop.f32.mrb[48].mxu1  ;;  %v2808_v22 = vadd.f32 %v6788_v57, %v2471_v16 }
 0x26d   :  { %v5059_v13 = vpop.f32.mrb[49].mxu1 }
 0x26e   :  { %v4876_v4 = vpop.f32.mrb[44].mxu0  ;;  %v6819_v30 = vadd.f32 %v5059_v13, %v5058_v53  ;;  %v5061_v32 = vpop.f32.mrb[50].mxu1  ;;  %v2811_v47 = vadd.f32 %v6790_v14, %v2474_v7 }
 0x26f   :  { %v4877_v55 = vpop.f32.mrb[45].mxu0  ;;  %v5062_v2 = vpop.f32.mrb[51].mxu1 }
 0x270   :  { %v4878_v36 = vadd.f32 %v4877_v55, %v4876_v4  ;;  %v4879_v40 = vpop.f32.mrb[46].mxu0  ;;  %v6822_v54 = vadd.f32 %v5062_v2, %v5061_v32 }
 0x271   :  { %v4880_v39 = vpop.f32.mrb[47].mxu0 }
 0x272   :  { %v2479_v25 = vadd.f32 %v4878_v36, %v6798_v58  ;;  %v4881_v29 = vadd.f32 %v4880_v39, %v4879_v40 }
 0x274   :  { %v2482_v8 = vadd.f32 %v4881_v29, %v4841_v18  ;;  %v5064_v34 = vpop.f32.mrb[52].mxu1  ;;  %v2816_v57 = vadd.f32 %v6792_v33, %v2479_v25 }
 0x275   :  { %v5065_v38 = vpop.f32.mrb[53].mxu1 }
 0x276   :  { %v4938_v41 = vpop.f32.mrb[48].mxu0  ;;  %v6826_v42 = vadd.f32 %v5065_v38, %v5064_v34  ;;  %v5067_v43 = vpop.f32.mrb[54].mxu1  ;;  %v2819_v14 = vadd.f32 %v6794_v27, %v2482_v8 }
 0x277   :  { %v4939_v19 = vpop.f32.mrb[49].mxu0  ;;  %v5068_v9 = vpop.f32.mrb[55].mxu1 }
 0x278   :  { %v4940_v45 = vadd.f32 %v4939_v19, %v4938_v41  ;;  %v4941_v37 = vpop.f32.mrb[50].mxu0  ;;  %v6829_v46 = vadd.f32 %v5068_v9, %v5067_v43 }
 0x279   :  { %v4942_v62 = vpop.f32.mrb[51].mxu0 }
 0x27a   :  { %v2857_v58 = vadd.f32 %v4940_v45, %v2792_v21  ;;  %v4943_v0 = vadd.f32 %v4942_v62, %v4941_v37 }
 0x27c   :  { %v2860_v18 = vadd.f32 %v4943_v0, %v2795_v49  ;;  %v5070_v31 = vpop.f32.mrb[56].mxu1 }
 0x27d   :  { %v5071_v5 = vpop.f32.mrb[57].mxu1 }
 0x27e   :  { %v4944_v33 = vpop.f32.mrb[52].mxu0  ;;  %v6831_v3 = vadd.f32 %v5071_v5, %v5070_v31  ;;  %v5073_v24 = vpop.f32.mrb[58].mxu1 }
 0x27f   :  { %v4945_v56 = vpop.f32.mrb[53].mxu0  ;;  %v5074_v60 = vpop.f32.mrb[59].mxu1 }
 0x280   :  { %v4946_v15 = vadd.f32 %v4945_v56, %v4944_v33  ;;  %v4947_v27 = vpop.f32.mrb[54].mxu0  ;;  %v6833_v59 = vadd.f32 %v5074_v60, %v5073_v24 }
 0x281   :  { %v4948_v44 = vpop.f32.mrb[55].mxu0 }
 0x282   :  { %v2865_v61 = vadd.f32 %v4946_v15, %v2800_v28  ;;  %v4949_v17 = vadd.f32 %v4948_v44, %v4947_v27 }
 0x284   :  { %v2868_v6 = vadd.f32 %v4949_v17, %v2803_v35  ;;  %v5076_v1 = vpop.f32.mrb[60].mxu1 }
 0x285   :  { %v5077_v21 = vpop.f32.mrb[61].mxu1 }
 0x286   :  { %v4950_v23 = vpop.f32.mrb[56].mxu0  ;;  %v5078_v49 = vadd.f32 %v5077_v21, %v5076_v1  ;;  %v5079_v48 = vpop.f32.mrb[62].mxu1 }
 0x287   :  { %v4951_v16 = vpop.f32.mrb[57].mxu0  ;;  %v5080_v51 = vpop.f32.mrb[63].mxu1 }
 0x288   :  { %v4952_v7 = vadd.f32 %v4951_v16, %v4950_v23  ;;  %v4953_v53 = vpop.f32.mrb[58].mxu0  ;;  %v5081_v13 = vadd.f32 %v5080_v51, %v5079_v48 }
 0x289   :  { %v4954_v4 = vpop.f32.mrb[59].mxu0 }
 0x28a   :  { %v2873_v32 = vadd.f32 %v4952_v7, %v2808_v22  ;;  %v4955_v55 = vadd.f32 %v4954_v4, %v4953_v53 }
 0x28c   :  { %v2876_v2 = vadd.f32 %v4955_v55, %v2811_v47  ;;  %v5116_v36 = vpop.f32.mrb[64].mxu1 }
 0x28d   :  { %v5117_v40 = vpop.f32.mrb[65].mxu1 }
 0x28e   :  { %v4956_v39 = vpop.f32.mrb[60].mxu0  ;;  %v5118_v28 = vadd.f32 %v5117_v40, %v5116_v36  ;;  %v5119_v25 = vpop.f32.mrb[66].mxu1 }
 0x28f   :  { %v4957_v35 = vpop.f32.mrb[61].mxu0  ;;  %v5120_v29 = vpop.f32.mrb[67].mxu1 }
 0x290   :  { %v4079_v8 = vadd.f32 %v5118_v28, %v5078_v49  ;;  %v4958_v34 = vadd.f32 %v4957_v35, %v4956_v39  ;;  %v4959_v38 = vpop.f32.mrb[62].mxu0  ;;  %v5121_v41 = vadd.f32 %v5120_v29, %v5119_v25 }
 0x291   :  { %v4960_v43 = vpop.f32.mrb[63].mxu0 }
 0x292   :  { %v2881_v19 = vadd.f32 %v4958_v34, %v2816_v57  ;;  %v4082_v9 = vadd.f32 %v5121_v41, %v5081_v13  ;;  %v4961_v45 = vadd.f32 %v4960_v43, %v4959_v38 }
 0x294   :  { %v2884_v37 = vadd.f32 %v4961_v45, %v2819_v14 }
 0x296   :  { %v5018_v62 = vpop.f32.mrb[64].mxu0 }
 0x297   :  { %v5019_v22 = vpop.f32.mrb[65].mxu0 }
 0x298   :  { %v5020_v0 = vadd.f32 %v5019_v22, %v5018_v62  ;;  %v5021_v47 = vpop.f32.mrb[66].mxu0 }
 0x299   :  { %v5022_v31 = vpop.f32.mrb[67].mxu0 }
 0x29a   :  { %v3340_v5 = vadd.f32 %v5020_v0, %v6796_v12  ;;  %v5023_v33 = vadd.f32 %v5022_v31, %v5021_v47 }
 0x29c   :  { %v3370_v24 = vadd.f32 %v3340_v5, %v2857_v58  ;;  %v3343_v56 = vadd.f32 %v5023_v33, %v6800_v63 }
 0x29e   :  { %v3371_v60 = vadd.f32 %v3343_v56, %v2860_v18  ;;  %v5024_v15 = vpop.f32.mrb[68].mxu0 }
 0x29f   :  { %v5025_v27 = vpop.f32.mrb[69].mxu0 }
 0x2a0   :  { %v5026_v44 = vadd.f32 %v5025_v27, %v5024_v15  ;;  %v5027_v17 = vpop.f32.mrb[70].mxu0 }
 0x2a1   :  { %v5028_v57 = vpop.f32.mrb[71].mxu0 }
 0x2a2   :  { %v3348_v1 = vadd.f32 %v5026_v44, %v6802_v20  ;;  %v5029_v14 = vadd.f32 %v5028_v57, %v5027_v17 }
 0x2a4   :  { %v3372_v21 = vadd.f32 %v3348_v1, %v2865_v61  ;;  %v3351_v23 = vadd.f32 %v5029_v14, %v6804_v10 }
 0x2a6   :  { %v3373_v49 = vadd.f32 %v3351_v23, %v2868_v6  ;;  %v5030_v48 = vpop.f32.mrb[72].mxu0 }
 0x2a7   :  { %v5031_v16 = vpop.f32.mrb[73].mxu0 }
 0x2a8   :  { %v5032_v12 = vadd.f32 %v5031_v16, %v5030_v48  ;;  %v5033_v51 = vpop.f32.mrb[74].mxu0 }
 0x2a9   :  { %v5034_v58 = vpop.f32.mrb[75].mxu0 }
 0x2aa   :  { %v3356_v63 = vadd.f32 %v5032_v12, %v6807_v50  ;;  %v5035_v18 = vadd.f32 %v5034_v58, %v5033_v51  ;;  %v4697_v50 = vld [vmem:[%s6886_s4] ss:$0 sm:$0xff] }
 0x2ac   :  { %v6840_v7 = vadd.f32 %v3356_v63, %v2873_v32  ;;  %v3359_v53 = vadd.f32 %v5035_v18, %v6810_v11 }
 0x2ae   :  { %v6843_v13 = vadd.f32 %v3359_v53, %v2876_v2  ;;  %v5036_v20 = vpop.f32.mrb[76].mxu0 }
 0x2af   :  { %v5037_v4 = vpop.f32.mrb[77].mxu0 }
 0x2b0   :  { %v5038_v61 = vadd.f32 %v5037_v4, %v5036_v20  ;;  %v5039_v55 = vpop.f32.mrb[78].mxu0 }
 0x2b1   :  { %v5040_v10 = vpop.f32.mrb[79].mxu0 }
 0x2b2   :  { %v3364_v6 = vadd.f32 %v5038_v61, %v6813_v52  ;;  %v5041_v36 = vadd.f32 %v5040_v10, %v5039_v55 }
 0x2b4   :  { %v3376_v40 = vadd.f32 %v3364_v6, %v2881_v19  ;;  %v3367_v39 = vadd.f32 %v5041_v36, %v6816_v26 }
 0x2b6   :  { %v4091_v32 = vadd.f32 %v4079_v8, %v3376_v40  ;;  %v3377_v28 = vadd.f32 %v3367_v39, %v2884_v37  ;;  %v5098_v11 = vpop.f32.mrb[80].mxu0 }
 0x2b7   :  { %v5099_v2 = vpop.f32.mrb[81].mxu0 }
 0x2b8   :  { %v4106_v25 = vadd.f32 %v4697_v50, %v4091_v32  ;;  %v4092_v35 = vadd.f32 %v4082_v9, %v3377_v28  ;;  %v5100_v29 = vadd.f32 %v5099_v2, %v5098_v11  ;;  %v5101_v34 = vpop.f32.mrb[82].mxu0 }
 0x2b9   :  { %v5102_v38 = vpop.f32.mrb[83].mxu0 }
 0x2ba   :  { %v4114_v41 = vmax.f32 %v4106_v25, 0.0  ;;  %v4107_v43 = vadd.f32 %v4697_v50, %v4092_v35  ;;  %v4055_v52 = vadd.f32 %v5100_v29, %v6819_v30  ;;  %v5103_v19 = vadd.f32 %v5102_v38, %v5101_v34 }
 0x2bc   :  { %4122 = vst [vmem:[%s6887_s5 + $0x30] sm:$0xff] %v4114_v41  ;;  %v4115_v26 = vmax.f32 %v4107_v43, 0.0  ;;  %v4085_v45 = vadd.f32 %v4055_v52, %v3370_v24  ;;  %v4058_v8 = vadd.f32 %v5103_v19, %v6822_v54 }
 0x2be   :  { %4123 = vst [vmem:[%s6887_s5 + $0x38] sm:$0xff] %v4115_v26  ;;  %v4100_v9 = vadd.f32 %v4697_v50, %v4085_v45  ;;  %v4086_v37 = vadd.f32 %v4058_v8, %v3371_v60  ;;  %v5104_v62 = vpop.f32.mrb[84].mxu0 }
 0x2bf   :  { %v5105_v22 = vpop.f32.mrb[85].mxu0 }
 0x2c0   :  { %v4108_v0 = vmax.f32 %v4100_v9, 0.0  ;;  %v4101_v47 = vadd.f32 %v4697_v50, %v4086_v37  ;;  %v5106_v30 = vadd.f32 %v5105_v22, %v5104_v62  ;;  %v5107_v31 = vpop.f32.mrb[86].mxu0 }
 0x2c1   :  { %v5108_v5 = vpop.f32.mrb[87].mxu0 }
 0x2c2   :  { %4116 = vst [vmem:[%s6887_s5] sm:$0xff] %v4108_v0  ;;  %v4109_v33 = vmax.f32 %v4101_v47, 0.0  ;;  %v4063_v54 = vadd.f32 %v5106_v30, %v6826_v42  ;;  %v5109_v24 = vadd.f32 %v5108_v5, %v5107_v31 }
 0x2c4   :  { %4117 = vst [vmem:[%s6887_s5 + $0x8] sm:$0xff] %v4109_v33  ;;  %v4087_v56 = vadd.f32 %v4063_v54, %v3372_v21  ;;  %v4066_v60 = vadd.f32 %v5109_v24, %v6829_v46 }
 0x2c6   :  { %v4102_v15 = vadd.f32 %v4697_v50, %v4087_v56  ;;  %v4088_v27 = vadd.f32 %v4066_v60, %v3373_v49  ;;  %v5110_v44 = vpop.f32.mrb[88].mxu0 }
 0x2c7   :  { %v5111_v17 = vpop.f32.mrb[89].mxu0 }
 0x2c8   :  { %v4110_v57 = vmax.f32 %v4102_v15, 0.0  ;;  %v4103_v1 = vadd.f32 %v4697_v50, %v4088_v27  ;;  %v5112_v14 = vadd.f32 %v5111_v17, %v5110_v44  ;;  %v5113_v23 = vpop.f32.mrb[90].mxu0 }
 0x2c9   :  { %v5114_v48 = vpop.f32.mrb[91].mxu0 }
 0x2ca   :  { %4118 = vst [vmem:[%s6887_s5 + $0x10] sm:$0xff] %v4110_v57  ;;  %v4111_v42 = vmax.f32 %v4103_v1, 0.0  ;;  %v4071_v16 = vadd.f32 %v5112_v14, %v6831_v3  ;;  %v5115_v12 = vadd.f32 %v5114_v48, %v5113_v23 }
 0x2cc   :  { %4119 = vst [vmem:[%s6887_s5 + $0x18] sm:$0xff] %v4111_v42  ;;  %v4089_v46 = vadd.f32 %v4071_v16, %v6840_v7  ;;  %v4074_v21 = vadd.f32 %v5115_v12, %v6833_v59 }
 0x2ce   :  { %v4104_v49 = vadd.f32 %v4697_v50, %v4089_v46  ;;  %v4090_v51 = vadd.f32 %v4074_v21, %v6843_v13 }
 0x2d0   :  { %v4112_v58 = vmax.f32 %v4104_v49, 0.0  ;;  %v4105_v63 = vadd.f32 %v4697_v50, %v4090_v51 }
 0x2d2   :  { %4120 = vst [vmem:[%s6887_s5 + $0x20] sm:$0xff] %v4112_v58  ;;  %v4113_v18 = vmax.f32 %v4105_v63, 0.0 }
 0x2d4   :  { %4121 = vst [vmem:[%s6887_s5 + $0x28] sm:$0xff] %v4113_v18 }

</bundles_post_ra>
